<compile_context>
chip_gen: v6e
topology: v6e:2x2x1
jax: 0.10.0
libtpu: 0.0.40
codegen_flags: <defaults>
</compile_context>

<pallas_src>
import math

import jax
import jax.numpy as jnp
from jax.experimental import pallas as pl
from jax.experimental.pallas import tpu as pltpu


def _add_relu_kernel(a_ref, b_ref, o_ref):
    o_ref[...] = jnp.maximum(a_ref[...] + b_ref[...], 0.0)


_COL_CANDIDATES = (1024, 896, 768, 640, 512, 384, 256, 128)  # lane-dense widths
_TARGET_BLOCK_BYTES = 4 * 1024 * 1024  # ~4 MiB per block per array
_MIN_BLOCK_BYTES = 512 * 1024          # never shrink blocks below ~512 KiB
_MIN_STEPS = 4                         # >= 2 grid steps per TensorCore on v7x


def add_relu(a: jax.Array, b: jax.Array) -> jax.Array:
    """Elementwise relu(a + b) via a lane-dense, tiled Pallas TPU kernel."""
    assert a.shape == b.shape and a.dtype == b.dtype
    orig_shape = a.shape
    E = math.prod(orig_shape)
    itemsize = jnp.dtype(a.dtype).itemsize
    sublane = 8 * max(1, 4 // itemsize)  # f32: 8, bf16: 16, int8: 32

    # Pick a lane-dense column count that divides E exactly so no HBM pad/slice
    # copies are ever materialized around the kernel.
    cols = None
    for c in _COL_CANDIDATES:
        if E % c == 0:
            cols = c
            break
    needs_pad = cols is None
    if needs_pad:
        # TODO(synk): rare fallback for element counts with no multiple-of-128
        # divisor; pads only to the next multiple of `cols` (ragged row blocks
        # are still masked by Pallas, never padded to the block size).
        cols = _COL_CANDIDATES[0]

    rows = pl.cdiv(E, cols)
    E_proc = rows * cols  # == E unless needs_pad

    a1 = a.reshape(-1)
    b1 = b.reshape(-1)
    if needs_pad:
        a1 = jnp.pad(a1, (0, E_proc - E))
        b1 = jnp.pad(b1, (0, E_proc - E))
    a2 = a1.reshape(rows, cols)
    b2 = b1.reshape(rows, cols)

    row_bytes = cols * itemsize
    total_bytes = rows * row_bytes

    # ~4 MiB blocks, sublane-aligned; but aim for >= _MIN_STEPS grid steps
    # (double-buffering per core on v7x) while keeping blocks >= 512 KiB.
    block_rows = max(
        sublane, (_TARGET_BLOCK_BYTES // row_bytes) // sublane * sublane
    )
    steps_cap = max(1, total_bytes // _MIN_BLOCK_BYTES)
    desired_steps = min(_MIN_STEPS, steps_cap)
    if desired_steps > 1:
        rows_per_step = pl.cdiv(pl.cdiv(rows, desired_steps), sublane) * sublane
        block_rows = min(block_rows, rows_per_step)
    if block_rows >= rows:
        block_rows = rows  # single full-extent block (legal for any row count)

    grid = (pl.cdiv(rows, block_rows),)

    cost = pl.CostEstimate(
        flops=2 * E_proc,
        transcendentals=0,
        bytes_accessed=3 * E_proc * itemsize,
    )

    out2 = pl.pallas_call(
        _add_relu_kernel,
        out_shape=jax.ShapeDtypeStruct((rows, cols), a.dtype),
        grid=grid,
        in_specs=[
            pl.BlockSpec((block_rows, cols), lambda i: (i, 0)),
            pl.BlockSpec((block_rows, cols), lambda i: (i, 0)),
        ],
        out_specs=pl.BlockSpec((block_rows, cols), lambda i: (i, 0)),
        compiler_params=pltpu.CompilerParams(
            dimension_semantics=("parallel",),
            vmem_limit_bytes=32 * 1024 * 1024,
        ),
        cost_estimate=cost,
    )(a2, b2)

    out1 = out2.reshape(-1)
    if needs_pad:
        out1 = out1[:E]
    return out1.reshape(orig_shape)


if __name__ == "__main__":
    key = jax.random.PRNGKey(0)
    k1, k2 = jax.random.split(key)
    # Shape from the PyTorch module: (1, 448, 28, 28), f32.
    shape = (1, 448, 28, 28)
    x55 = jax.random.normal(k1, shape, dtype=jnp.float32)
    x69 = jax.random.normal(k2, shape, dtype=jnp.float32)

    out = jax.block_until_ready(add_relu(x55, x69))

    # Sanity check against plain JAX reference.
    ref = jnp.maximum(x55 + x69, 0.0)
    assert out.shape == shape and out.dtype == jnp.float32
    assert jnp.allclose(out, ref, atol=1e-6, rtol=1e-6)

    print("KERNEL_OK")
</pallas_src>

<mosaic_0001>
module attributes {stable_mosaic.version = 11 : i64} {
  func.func @_add_relu_kernel(%arg0: i32, %arg1: memref<176x1024xf32, #tpu.memory_space<vmem>>, %arg2: memref<176x1024xf32, #tpu.memory_space<vmem>>, %arg3: memref<176x1024xf32, #tpu.memory_space<vmem>>) attributes {dimension_semantics = [#tpu.dimension_semantics<parallel>], iteration_bounds = array<i64: 2>, scalar_prefetch = 0 : i64, scratch_operands = 0 : i64, tpu.core_type = #tpu.core_type<tc>, window_params = [{transform_indices = @transform_0, window_bounds = array<i64: 176, 1024>}, {transform_indices = @transform_1, window_bounds = array<i64: 176, 1024>}, {transform_indices = @transform_2, window_bounds = array<i64: 176, 1024>}]} {
    %c0 = arith.constant 0 : index
    %c0_0 = arith.constant 0 : index
    %0 = vector.load %arg1[%c0, %c0_0] : memref<176x1024xf32, #tpu.memory_space<vmem>>, vector<176x1024xf32>
    %c0_1 = arith.constant 0 : index
    %c0_2 = arith.constant 0 : index
    %1 = vector.load %arg2[%c0_1, %c0_2] : memref<176x1024xf32, #tpu.memory_space<vmem>>, vector<176x1024xf32>
    %2 = arith.addf %0, %1 : vector<176x1024xf32>
    %cst = arith.constant 0.000000e+00 : f32
    %3 = vector.broadcast %cst : f32 to vector<176x1024xf32>
    %4 = arith.maximumf %2, %3 : vector<176x1024xf32>
    %c0_3 = arith.constant 0 : index
    %c0_4 = arith.constant 0 : index
    %5 = vector.load %arg3[%c0_3, %c0_4] : memref<176x1024xf32, #tpu.memory_space<vmem>>, vector<176x1024xf32>
    tpu.vector_store %arg3[%c0_3, %c0_4], %4 {strides = array<i32>} : memref<176x1024xf32, #tpu.memory_space<vmem>>, vector<176x1024xf32>,
    return
  }
  func.func @transform_0(%arg0: i32) -> (i32, i32) {
    %c0_i32 = arith.constant 0 : i32
    %c0_i32_0 = arith.constant 0 : i32
    return %arg0, %c0_i32 : i32, i32
  }
  func.func @transform_1(%arg0: i32) -> (i32, i32) {
    %c0_i32 = arith.constant 0 : i32
    %c0_i32_0 = arith.constant 0 : i32
    return %arg0, %c0_i32 : i32, i32
  }
  func.func @transform_2(%arg0: i32) -> (i32, i32) {
    %c0_i32 = arith.constant 0 : i32
    %c0_i32_0 = arith.constant 0 : i32
    return %arg0, %c0_i32 : i32, i32
  }
}

</mosaic_0001>

<bundles_post_ra>
// kernel: tpu_custom_call.1
= control target key start
LH: loop header
LB: loop body
LE: loop exit
PB: predicated region body
PF: predicated region fallthrough
CT: control target
= control target key end

     0   :  { %7 = vsyncpa [#allocation3], 0  ;;  %s2230_s0 = inlined_call_operand.hbm [shape: f32[343,1024], index: 0, kind: input, shape index: {}]   ;;  %s2231_s1 = inlined_call_operand.hbm [shape: f32[343,1024], index: 1, kind: input, shape index: {}]   ;;  %s2232_s2 = inlined_call_operand.hbm [shape: f32[343,1024], index: 2, kind: output, shape index: {}]  }
   0x1   :  { %9 = vsyncpa [#allocation3 + $0x1], 0 }
   0x2   :  { %10 = vsyncpa [#allocation6], 0 }
   0x3   :  { %12 = vsyncpa [#allocation6 + $0x1], 0 }
   0x4   :  { %13 = vsyncpa [#allocation4], 0 }
   0x5   :  { %15 = vsyncpa [#allocation4 + $0x1], 0  ;;  %s1468_s9 = smov 0   ;;  %s1470_s10 = smov 0  }
   0x6   :  { %s1472_s11 = smov 0   ;;  %s1474_s12 = smov 0  }
   0x7 LB: > { %s1489_s13 = sadd.s32 4294967295, %s1442_s12   ;;  %s1234_s14 = sadd.s32 4294967294, %s1442_s12   ;;  %s1442_s12 = sphi %s1474_s12, %s2244_s12   ;;  %s1438_s11 = sphi %s1472_s11, %s2243_s11   ;;  %s1434_s10 = sphi %s1470_s10, %s2242_s10   ;;  %s1430_s9 = sphi %s1468_s9, %s2241_s9  }
   0x8   : > { %s1493_s15 = sadd.s32 1, %s1442_s12   ;;  %s28_s16 = sadd.s32 1, %s1438_s11 }
   0x9   : > { %s25_s17 = ssub.s32 %s1442_s12, %s1493_s15  ;;  %p35_p0 = scmp.ne.s32.totalorder %s1438_s11, %s1434_s10 }
   0xa   : > { %p26_p1 = scmp.eq.s32.totalorder %s25_s17, 0  ;;  %p36_p2 = scmp.eq.s32.totalorder %s1442_s12, 0 }
   0xb   : > { %p41_p3 = scmp.ne.s32.totalorder %s1434_s10, %s1430_s9  ;;  %p42_p4 = scmp.eq.s32.totalorder %s1489_s13, 0 }
   0xc   : > { %s1505_s18 = scalar_select %p26_p1, %s1438_s11, %s28_s16  }
   0xd   : > { %p1507_p5 = por %p36_p2, %p35_p0  ;;  %p1511_p6 = por %p42_p4, %p41_p3 }
   0xe   : > { %p91_p7 = scmp.eq.s32.totalorder %s1489_s13, 1  ;;  %p97_p8 = scmp.eq.s32.totalorder %s1234_s14, 1 }
   0xf   : > { %p2233_p11 = scmp.ge.s32.totalorder %s1442_s12, 2 }
  0x10   : > { %p1516_p9 = por %p91_p7, %p35_p0  ;;  %p1520_p10 = por %p97_p8, %p41_p3 }
  0x11   : > { %113 = sbr.rel (%p2233_p11) target bundleno = 90 (0x5a), region = 16 }
  0x12   : > { %s2236_s21 = scalar_select %p1516_p9, 1, 0 }
  0x13   : > { %s2237_s22 = scalar_select %p1520_p10, 1, 0 }
  0x16   : > { %116 = sbr.rel (!%p1507_p5) target bundleno = 56 (0x38), region = 20  ;;  %s117_s23 = sand.u32 (%p1507_p5), 1, %s1438_s11  }
  0x17   : > { %s122_s24 = smul.u32 (%p1507_p5), 22, %s1442_s12  ;;  %s1534_s29 = scalar_lea.sflag (%p1507_p5), [#allocation3], %s117_s23 }
  0x18   : > { %s1273_s25 = smul.u32 (%p1507_p5), 1408, %s117_s23 }
  0x19   : > { %s123_s26 = ssub.s32 (%p1507_p5), 43, %s122_s24 }
  0x1a   : > { %p124_p12 = scmp.lt.s32.totalorder (%p1507_p5), %s123_s26, 22  ;;  %s121_s30 = scalar_lea.vmem (%p1507_p5), [#allocation2], %s1273_s25 }
  0x1c   : > { %s2246_s26 = smov (!%p124_p12, %s123_s26), 22 }
  0x1d   : > { %s1531_s27 = sshll.u32 %s2246_s26, 10 }
  0x1e   : > { %s129_s28 = ssub.s32 22528, %s1531_s27 }
  0x1f   : > { %130 = vsyncadd %s1534_s29, %s129_s28  ;;  %p1239_p13 = scmp.ne.s32.totalorder %s1531_s27, 0  ;;  %s1270_s3 = smul.u32 22528, %s1442_s12 }
  0x20   : > { %s136_s4 = sshll.u32 %s121_s30, 4  ;;  %s1326_s17 = scalar_lea.hbm %s2230_s0, 44032  ;;  %s1544_s4 = int_to_ptr.vmem [resolvable:$true] %s136_s4 }
  0x21   : > { %s1542_s7 = scalar_lea.hbm %s2230_s0, %s1270_s3 }
  0x22   : > { %s1322_s8 = scalar_lea.hbm %s1542_s7, %s1531_s27  ;;  %p1327_p3 = scmp.lt.s32.totalorder %s1542_s7, %s2230_s0 }
  0x23   : > { %p1323_p0 = scmp.ne.s32.totalorder %s1542_s7, %s1322_s8  ;;  %p1328_p4 = scmp.lt.s32.totalorder %s1326_s17, %s1322_s8 }
  0x25   : > { %p1324_p1 = pnand %p1323_p0, %p1239_p13  ;;  %p1329_p7 = por %p1328_p4, %p1327_p3 }
  0x27   : > { %p1325_p2 = pneg %p1324_p1 }
  0x29   : > { %p1330_p8 = pnand %p1329_p7, %p1325_p2 }
  0x2b   : > { %1333 = shalt.err (!%p1330_p8)
}
  0x2c   : > { %s1334_s25 = scalar_lea.vmem %s1544_s4, %s1531_s27  ;;  %s1444_s26 = smov [#allocation2]  }
  0x2d   : > { %p1335_p12 = scmp.ne.s32.totalorder %s1544_s4, %s1334_s25  ;;  %s1338_s28 = sshll.u32 %s1444_s26, 4  ;;  %s1339_s28 = int_to_ptr.vmem [resolvable:$false] %s1338_s28 }
  0x2e   : > { %s1340_s30 = scalar_lea.vmem %s1339_s28, 45056  ;;  %p1341_p11 = scmp.lt.s32.totalorder %s1544_s4, %s1339_s28 }
  0x2f   : > { %p1336_p0 = pnand %p1335_p12, %p1239_p13  ;;  %p1342_p10 = scmp.lt.s32.totalorder %s1340_s30, %s1334_s25 }
  0x31   : > { %p1337_p1 = pneg %p1336_p0  ;;  %p1343_p9 = por %p1342_p10, %p1341_p11 }
  0x33   : > { %p1344_p3 = pnand %p1343_p9, %p1337_p1 }
  0x35   : > { %1347 = shalt.err (!%p1344_p3)
}
  0x36   : > { %s1445_s3 = smov 1024   ;;  %s1446_s5 = smov 64  }
  0x37   : > { %142 = dma.hbm_to_vmem [thread:$0]  (%p1239_p13), %s1542_s7, %s1531_s27, %s1544_s4, %s1534_s29, %s1445_s3, %s1445_s3, %s1446_s5  }
  0x38 PF: > { %145 = sbr.rel (!%p1507_p5) target bundleno = 90 (0x5a), region = 24  ;;  %s146_s6 = sand.u32 (%p1507_p5), 1, %s1438_s11  }
  0x39   : > { %s151_s8 = smul.u32 (%p1507_p5), 22, %s1442_s12  ;;  %s1577_s24 = scalar_lea.sflag (%p1507_p5), [#allocation6], %s146_s6 }
  0x3a   : > { %s1274_s14 = smul.u32 (%p1507_p5), 1408, %s146_s6 }
  0x3b   : > { %s152_s16 = ssub.s32 (%p1507_p5), 43, %s151_s8 }
  0x3c   : > { %p153_p9 = scmp.lt.s32.totalorder (%p1507_p5), %s152_s16, 22  ;;  %s150_s27 = scalar_lea.vmem (%p1507_p5), [#allocation5], %s1274_s14 }
  0x3e   : > { %s2248_s16 = smov (!%p153_p9, %s152_s16), 22 }
  0x3f   : > { %s1574_s17 = sshll.u32 %s2248_s16, 10 }
  0x40   : > { %s158_s23 = ssub.s32 22528, %s1574_s17 }
  0x41   : > { %159 = vsyncadd %s1577_s24, %s158_s23  ;;  %p1246_p5 = scmp.ne.s32.totalorder %s1574_s17, 0  ;;  %s1271_s19 = smul.u32 22528, %s1442_s12 }
  0x42   : > { %s165_s29 = sshll.u32 %s150_s27, 4  ;;  %s1352_s3 = scalar_lea.hbm %s2231_s1, 44032  ;;  %s1587_s29 = int_to_ptr.vmem [resolvable:$true] %s165_s29 }
  0x43   : > { %s1585_s25 = scalar_lea.hbm %s2231_s1, %s1271_s19 }
  0x44   : > { %s1348_s26 = scalar_lea.hbm %s1585_s25, %s1574_s17  ;;  %p1353_p2 = scmp.lt.s32.totalorder %s1585_s25, %s2231_s1 }
  0x45   : > { %p1349_p10 = scmp.ne.s32.totalorder %s1585_s25, %s1348_s26  ;;  %p1354_p4 = scmp.lt.s32.totalorder %s1352_s3, %s1348_s26 }
  0x47   : > { %p1350_p11 = pnand %p1349_p10, %p1246_p5  ;;  %p1355_p7 = por %p1354_p4, %p1353_p2 }
  0x49   : > { %p1351_p13 = pneg %p1350_p11 }
  0x4b   : > { %p1356_p8 = pnand %p1355_p7, %p1351_p13 }
  0x4d   : > { %1359 = shalt.err (!%p1356_p8)
}
  0x4e   : > { %s1360_s8 = scalar_lea.vmem %s1587_s29, %s1574_s17  ;;  %s1447_s14 = smov [#allocation5]  }
  0x4f   : > { %p1361_p12 = scmp.ne.s32.totalorder %s1587_s29, %s1360_s8  ;;  %s1364_s16 = sshll.u32 %s1447_s14, 4  ;;  %s1365_s16 = int_to_ptr.vmem [resolvable:$false] %s1364_s16 }
  0x50   : > { %s1366_s23 = scalar_lea.vmem %s1365_s16, 45056  ;;  %p1367_p3 = scmp.lt.s32.totalorder %s1587_s29, %s1365_s16 }
  0x51   : > { %p1362_p0 = pnand %p1361_p12, %p1246_p5  ;;  %p1368_p9 = scmp.lt.s32.totalorder %s1366_s23, %s1360_s8 }
  0x53   : > { %p1363_p1 = pneg %p1362_p0  ;;  %p1369_p10 = por %p1368_p9, %p1367_p3 }
  0x55   : > { %p1370_p11 = pnand %p1369_p10, %p1363_p1 }
  0x57   : > { %1373 = shalt.err (!%p1370_p11)
}
  0x58   : > { %s1448_s27 = smov 1024   ;;  %s1449_s19 = smov 64  }
  0x59   : > { %171 = dma.hbm_to_vmem [thread:$0]  (%p1246_p5), %s1585_s25, %s1574_s17, %s1587_s29, %s1577_s24, %s1448_s27, %s1448_s27, %s1449_s19  }
  0x5a PF: > { %p1251_p13 = scmp.ge.s32.totalorder %s1442_s12, 1  ;;  %p173_p2 = scmp.lt.s32.totalorder %s1442_s12, 3 }
  0x5c   : > { %p174_p4 = pnand %p1251_p13, %p173_p2 }
  0x5d   : > { %s1616_s4 = sand.u32 (!%p174_p4), 1, %s1434_s10  }
  0x5e   : > { %177 = sbr.rel (%p174_p4) target bundleno = 271 (0x10f), region = 28  ;;  %s180_s26 = scalar_lea.sflag (!%p174_p4), [#allocation3], %s1616_s4 }
  0x5f   : > { %s1619_s7 = smul.u32 (!%p174_p4), 1408, %s1616_s4 }
  0x61   : > { %s1623_s28 = scalar_lea.vmem (!%p174_p4), [#allocation2], %s1619_s7 }
  0x63   : > { %1417 = dma.done.wait (%p1511_p6), %s180_s26, 22528  }
  0x64   : > { %1419 = vsyncadd (%p1511_p6), %s180_s26, 4294944768  ;;  %s189_s17 = scalar_lea.sflag [#allocation6], %s1616_s4  ;;  %s1631_s24 = scalar_lea.vmem [#allocation5], %s1619_s7 }
  0x65   : > { %1421 = dma.done.wait (%p1511_p6), %s189_s17, 22528  }
  0x66   : > { %1423 = vsyncadd (%p1511_p6), %s189_s17, 4294944768  ;;  %v236_v0 = vld [vmem:[%s1623_s28] sm:$0xff]  ;;  %v237_v2 = vld [vmem:[%s1623_s28 + $0x8] sm:$0xff]  ;;  %s1653_s20 = scalar_lea.vmem [#allocation7], %s1619_s7  ;;  %s1117_s29 = scalar_lea.sflag [#allocation4], %s1616_s4 }
  0x67   : > { %v412_v1 = vld [vmem:[%s1631_s24] sm:$0xff]  ;;  %v413_v4 = vld [vmem:[%s1631_s24 + $0x8] sm:$0xff]  ;;  %v238_v5 = vld [vmem:[%s1623_s28 + $0x10] sm:$0xff]  ;;  %p2238_p6 = scmp.ne.s32.totalorder %s2236_s21, 0 }
  0x68   : > { %v588_v3 = vadd.f32 %v412_v1, %v236_v0  ;;  %v414_v6 = vld [vmem:[%s1631_s24 + $0x10] sm:$0xff]  ;;  %v589_v7 = vadd.f32 %v413_v4, %v237_v2  ;;  %v239_v9 = vld [vmem:[%s1623_s28 + $0x18] sm:$0xff]  ;;  %v240_v11 = vld [vmem:[%s1623_s28 + $0x20] sm:$0xff]  ;;  %s1124_s25 = smul.u32 (%p2238_p6), 22, %s1489_s13 }
  0x69   : > { %v590_v8 = vadd.f32 %v414_v6, %v238_v5  ;;  %v415_v10 = vld [vmem:[%s1631_s24 + $0x18] sm:$0xff]  ;;  %v416_v14 = vld [vmem:[%s1631_s24 + $0x20] sm:$0xff]  ;;  %v241_v15 = vld [vmem:[%s1623_s28 + $0x28] sm:$0xff] }
  0x6a   : > { %v764_v12 = vmax.f32 %v588_v3, 0.0  ;;  %v591_v13 = vadd.f32 %v415_v10, %v239_v9  ;;  %v417_v16 = vld [vmem:[%s1631_s24 + $0x28] sm:$0xff]  ;;  %v765_v17 = vmax.f32 %v589_v7, 0.0  ;;  %v592_v19 = vadd.f32 %v416_v14, %v240_v11  ;;  %v242_v21 = vld [vmem:[%s1623_s28 + $0x30] sm:$0xff]  ;;  %v243_v23 = vld [vmem:[%s1623_s28 + $0x38] sm:$0xff]  ;;  %s1125_s30 = ssub.s32 (%p2238_p6), 43, %s1124_s25 }
  0x6b   : > { %v766_v18 = vmax.f32 %v590_v8, 0.0  ;;  %v593_v20 = vadd.f32 %v417_v16, %v241_v15  ;;  %v418_v22 = vld [vmem:[%s1631_s24 + $0x30] sm:$0xff]  ;;  %v419_v26 = vld [vmem:[%s1631_s24 + $0x38] sm:$0xff]  ;;  %v244_v27 = vld [vmem:[%s1623_s28 + $0x40] sm:$0xff]  ;;  %p1126_p5 = scmp.lt.s32.totalorder (%p2238_p6), %s1125_s30, 22 }
  0x6c   : > { %940 = vst [vmem:[%s1653_s20] sm:$0xff] %v764_v12  ;;  %v767_v24 = vmax.f32 %v591_v13, 0.0  ;;  %v594_v25 = vadd.f32 %v418_v22, %v242_v21  ;;  %v420_v28 = vld [vmem:[%s1631_s24 + $0x40] sm:$0xff]  ;;  %941 = vst [vmem:[%s1653_s20 + $0x8] sm:$0xff] %v765_v17  ;;  %v768_v29 = vmax.f32 %v592_v19, 0.0  ;;  %v595_v31 = vadd.f32 %v419_v26, %v243_v23  ;;  %v245_v33 = vld [vmem:[%s1623_s28 + $0x48] sm:$0xff] }
  0x6d   : > { %942 = vst [vmem:[%s1653_s20 + $0x10] sm:$0xff] %v766_v18  ;;  %v769_v30 = vmax.f32 %v593_v20, 0.0  ;;  %v596_v32 = vadd.f32 %v420_v28, %v244_v27  ;;  %v421_v34 = vld [vmem:[%s1631_s24 + $0x48] sm:$0xff]  ;;  %v246_v35 = vld [vmem:[%s1623_s28 + $0x50] sm:$0xff]  ;;  %v247_v39 = vld [vmem:[%s1623_s28 + $0x58] sm:$0xff] }
  0x6e   : > { %943 = vst [vmem:[%s1653_s20 + $0x18] sm:$0xff] %v767_v24  ;;  %v770_v36 = vmax.f32 %v594_v25, 0.0  ;;  %v597_v37 = vadd.f32 %v421_v34, %v245_v33  ;;  %v422_v38 = vld [vmem:[%s1631_s24 + $0x50] sm:$0xff]  ;;  %v423_v40 = vld [vmem:[%s1631_s24 + $0x58] sm:$0xff]  ;;  %944 = vst [vmem:[%s1653_s20 + $0x20] sm:$0xff] %v768_v29  ;;  %v771_v41 = vmax.f32 %v595_v31, 0.0 }
  0x6f   : > { %945 = vst [vmem:[%s1653_s20 + $0x28] sm:$0xff] %v769_v30  ;;  %v772_v42 = vmax.f32 %v596_v32, 0.0  ;;  %v598_v43 = vadd.f32 %v422_v38, %v246_v35  ;;  %v599_v44 = vadd.f32 %v423_v40, %v247_v39  ;;  %v248_v45 = vld [vmem:[%s1623_s28 + $0x60] sm:$0xff]  ;;  %v249_v47 = vld [vmem:[%s1623_s28 + $0x68] sm:$0xff]  ;;  %v250_v51 = vld [vmem:[%s1623_s28 + $0x70] sm:$0xff] }
  0x70   : > { %v424_v46 = vld [vmem:[%s1631_s24 + $0x60] sm:$0xff]  ;;  %946 = vst [vmem:[%s1653_s20 + $0x30] sm:$0xff] %v770_v36  ;;  %v773_v48 = vmax.f32 %v597_v37, 0.0  ;;  %v425_v50 = vld [vmem:[%s1631_s24 + $0x68] sm:$0xff]  ;;  %v426_v52 = vld [vmem:[%s1631_s24 + $0x70] sm:$0xff] }
  0x71   : > { %v600_v49 = vadd.f32 %v424_v46, %v248_v45  ;;  %947 = vst [vmem:[%s1653_s20 + $0x38] sm:$0xff] %v771_v41  ;;  %948 = vst [vmem:[%s1653_s20 + $0x40] sm:$0xff] %v772_v42  ;;  %v774_v53 = vmax.f32 %v598_v43, 0.0  ;;  %v775_v54 = vmax.f32 %v599_v44, 0.0  ;;  %v601_v55 = vadd.f32 %v425_v50, %v249_v47  ;;  %v251_v57 = vld [vmem:[%s1623_s28 + $0x78] sm:$0xff]  ;;  %v252_v59 = vld [vmem:[%s1623_s28 + $0x80] sm:$0xff] }
  0x72   : > { %v602_v56 = vadd.f32 %v426_v52, %v250_v51  ;;  %v427_v58 = vld [vmem:[%s1631_s24 + $0x78] sm:$0xff]  ;;  %949 = vst [vmem:[%s1653_s20 + $0x48] sm:$0xff] %v773_v48  ;;  %v428_v62 = vld [vmem:[%s1631_s24 + $0x80] sm:$0xff]  ;;  %v253_v63 = vld [vmem:[%s1623_s28 + $0x88] sm:$0xff] }
  0x73   : > { %v776_v60 = vmax.f32 %v600_v49, 0.0  ;;  %v603_v61 = vadd.f32 %v427_v58, %v251_v57  ;;  %v429_v0 = vld [vmem:[%s1631_s24 + $0x88] sm:$0xff]  ;;  %950 = vst [vmem:[%s1653_s20 + $0x50] sm:$0xff] %v774_v53  ;;  %951 = vst [vmem:[%s1653_s20 + $0x58] sm:$0xff] %v775_v54  ;;  %v777_v1 = vmax.f32 %v601_v55, 0.0  ;;  %v604_v3 = vadd.f32 %v428_v62, %v252_v59  ;;  %v254_v5 = vld [vmem:[%s1623_s28 + $0x90] sm:$0xff] }
  0x74   : > { %v778_v2 = vmax.f32 %v602_v56, 0.0  ;;  %v605_v4 = vadd.f32 %v429_v0, %v253_v63  ;;  %v430_v6 = vld [vmem:[%s1631_s24 + $0x90] sm:$0xff]  ;;  %v255_v7 = vld [vmem:[%s1623_s28 + $0x98] sm:$0xff]  ;;  %v256_v11 = vld [vmem:[%s1623_s28 + $0xa0] sm:$0xff] }
  0x75   : > { %952 = vst [vmem:[%s1653_s20 + $0x60] sm:$0xff] %v776_v60  ;;  %v779_v8 = vmax.f32 %v603_v61, 0.0  ;;  %v606_v9 = vadd.f32 %v430_v6, %v254_v5  ;;  %v431_v10 = vld [vmem:[%s1631_s24 + $0x98] sm:$0xff]  ;;  %v432_v12 = vld [vmem:[%s1631_s24 + $0xa0] sm:$0xff]  ;;  %953 = vst [vmem:[%s1653_s20 + $0x68] sm:$0xff] %v777_v1  ;;  %v780_v13 = vmax.f32 %v604_v3, 0.0 }
  0x76   : > { %954 = vst [vmem:[%s1653_s20 + $0x70] sm:$0xff] %v778_v2  ;;  %v781_v14 = vmax.f32 %v605_v4, 0.0  ;;  %v607_v15 = vadd.f32 %v431_v10, %v255_v7  ;;  %v608_v16 = vadd.f32 %v432_v12, %v256_v11  ;;  %v257_v17 = vld [vmem:[%s1623_s28 + $0xa8] sm:$0xff]  ;;  %v258_v19 = vld [vmem:[%s1623_s28 + $0xb0] sm:$0xff]  ;;  %v259_v23 = vld [vmem:[%s1623_s28 + $0xb8] sm:$0xff] }
  0x77   : > { %v433_v18 = vld [vmem:[%s1631_s24 + $0xa8] sm:$0xff]  ;;  %955 = vst [vmem:[%s1653_s20 + $0x78] sm:$0xff] %v779_v8  ;;  %v782_v20 = vmax.f32 %v606_v9, 0.0  ;;  %v434_v22 = vld [vmem:[%s1631_s24 + $0xb0] sm:$0xff]  ;;  %v435_v24 = vld [vmem:[%s1631_s24 + $0xb8] sm:$0xff] }
  0x78   : > { %v609_v21 = vadd.f32 %v433_v18, %v257_v17  ;;  %956 = vst [vmem:[%s1653_s20 + $0x80] sm:$0xff] %v780_v13  ;;  %957 = vst [vmem:[%s1653_s20 + $0x88] sm:$0xff] %v781_v14  ;;  %v783_v25 = vmax.f32 %v607_v15, 0.0  ;;  %v784_v26 = vmax.f32 %v608_v16, 0.0  ;;  %v610_v27 = vadd.f32 %v434_v22, %v258_v19  ;;  %v260_v29 = vld [vmem:[%s1623_s28 + $0xc0] sm:$0xff]  ;;  %v261_v31 = vld [vmem:[%s1623_s28 + $0xc8] sm:$0xff] }
  0x79   : > { %v611_v28 = vadd.f32 %v435_v24, %v259_v23  ;;  %v436_v30 = vld [vmem:[%s1631_s24 + $0xc0] sm:$0xff]  ;;  %958 = vst [vmem:[%s1653_s20 + $0x90] sm:$0xff] %v782_v20  ;;  %v437_v34 = vld [vmem:[%s1631_s24 + $0xc8] sm:$0xff]  ;;  %v262_v35 = vld [vmem:[%s1623_s28 + $0xd0] sm:$0xff] }
  0x7a   : > { %v785_v32 = vmax.f32 %v609_v21, 0.0  ;;  %v612_v33 = vadd.f32 %v436_v30, %v260_v29  ;;  %v438_v36 = vld [vmem:[%s1631_s24 + $0xd0] sm:$0xff]  ;;  %959 = vst [vmem:[%s1653_s20 + $0x98] sm:$0xff] %v783_v25  ;;  %960 = vst [vmem:[%s1653_s20 + $0xa0] sm:$0xff] %v784_v26  ;;  %v786_v37 = vmax.f32 %v610_v27, 0.0  ;;  %v613_v39 = vadd.f32 %v437_v34, %v261_v31  ;;  %v263_v41 = vld [vmem:[%s1623_s28 + $0xd8] sm:$0xff] }
  0x7b   : > { %v787_v38 = vmax.f32 %v611_v28, 0.0  ;;  %v614_v40 = vadd.f32 %v438_v36, %v262_v35  ;;  %v439_v42 = vld [vmem:[%s1631_s24 + $0xd8] sm:$0xff]  ;;  %v264_v43 = vld [vmem:[%s1623_s28 + $0xe0] sm:$0xff]  ;;  %v265_v47 = vld [vmem:[%s1623_s28 + $0xe8] sm:$0xff] }
  0x7c   : > { %961 = vst [vmem:[%s1653_s20 + $0xa8] sm:$0xff] %v785_v32  ;;  %v788_v44 = vmax.f32 %v612_v33, 0.0  ;;  %v615_v45 = vadd.f32 %v439_v42, %v263_v41  ;;  %v440_v46 = vld [vmem:[%s1631_s24 + $0xe0] sm:$0xff]  ;;  %v441_v48 = vld [vmem:[%s1631_s24 + $0xe8] sm:$0xff]  ;;  %962 = vst [vmem:[%s1653_s20 + $0xb0] sm:$0xff] %v786_v37  ;;  %v789_v49 = vmax.f32 %v613_v39, 0.0 }
  0x7d   : > { %963 = vst [vmem:[%s1653_s20 + $0xb8] sm:$0xff] %v787_v38  ;;  %v790_v50 = vmax.f32 %v614_v40, 0.0  ;;  %v616_v51 = vadd.f32 %v440_v46, %v264_v43  ;;  %v617_v52 = vadd.f32 %v441_v48, %v265_v47  ;;  %v266_v53 = vld [vmem:[%s1623_s28 + $0xf0] sm:$0xff]  ;;  %v267_v55 = vld [vmem:[%s1623_s28 + $0xf8] sm:$0xff]  ;;  %v268_v59 = vld [vmem:[%s1623_s28 + $0x100] sm:$0xff] }
  0x7e   : > { %v442_v54 = vld [vmem:[%s1631_s24 + $0xf0] sm:$0xff]  ;;  %964 = vst [vmem:[%s1653_s20 + $0xc0] sm:$0xff] %v788_v44  ;;  %v791_v56 = vmax.f32 %v615_v45, 0.0  ;;  %v443_v58 = vld [vmem:[%s1631_s24 + $0xf8] sm:$0xff]  ;;  %v444_v60 = vld [vmem:[%s1631_s24 + $0x100] sm:$0xff] }
  0x7f   : > { %v618_v57 = vadd.f32 %v442_v54, %v266_v53  ;;  %965 = vst [vmem:[%s1653_s20 + $0xc8] sm:$0xff] %v789_v49  ;;  %966 = vst [vmem:[%s1653_s20 + $0xd0] sm:$0xff] %v790_v50  ;;  %v792_v61 = vmax.f32 %v616_v51, 0.0  ;;  %v793_v62 = vmax.f32 %v617_v52, 0.0  ;;  %v619_v63 = vadd.f32 %v443_v58, %v267_v55  ;;  %v269_v1 = vld [vmem:[%s1623_s28 + $0x108] sm:$0xff]  ;;  %v270_v3 = vld [vmem:[%s1623_s28 + $0x110] sm:$0xff] }
  0x80   : > { %v620_v0 = vadd.f32 %v444_v60, %v268_v59  ;;  %v445_v2 = vld [vmem:[%s1631_s24 + $0x108] sm:$0xff]  ;;  %967 = vst [vmem:[%s1653_s20 + $0xd8] sm:$0xff] %v791_v56  ;;  %v446_v6 = vld [vmem:[%s1631_s24 + $0x110] sm:$0xff]  ;;  %v271_v7 = vld [vmem:[%s1623_s28 + $0x118] sm:$0xff] }
  0x81   : > { %v794_v4 = vmax.f32 %v618_v57, 0.0  ;;  %v621_v5 = vadd.f32 %v445_v2, %v269_v1  ;;  %v447_v8 = vld [vmem:[%s1631_s24 + $0x118] sm:$0xff]  ;;  %968 = vst [vmem:[%s1653_s20 + $0xe0] sm:$0xff] %v792_v61  ;;  %969 = vst [vmem:[%s1653_s20 + $0xe8] sm:$0xff] %v793_v62  ;;  %v795_v9 = vmax.f32 %v619_v63, 0.0  ;;  %v622_v11 = vadd.f32 %v446_v6, %v270_v3  ;;  %v272_v13 = vld [vmem:[%s1623_s28 + $0x120] sm:$0xff] }
  0x82   : > { %v796_v10 = vmax.f32 %v620_v0, 0.0  ;;  %v623_v12 = vadd.f32 %v447_v8, %v271_v7  ;;  %v448_v14 = vld [vmem:[%s1631_s24 + $0x120] sm:$0xff]  ;;  %v273_v15 = vld [vmem:[%s1623_s28 + $0x128] sm:$0xff]  ;;  %v274_v19 = vld [vmem:[%s1623_s28 + $0x130] sm:$0xff] }
  0x83   : > { %970 = vst [vmem:[%s1653_s20 + $0xf0] sm:$0xff] %v794_v4  ;;  %v797_v16 = vmax.f32 %v621_v5, 0.0  ;;  %v624_v17 = vadd.f32 %v448_v14, %v272_v13  ;;  %v449_v18 = vld [vmem:[%s1631_s24 + $0x128] sm:$0xff]  ;;  %v450_v20 = vld [vmem:[%s1631_s24 + $0x130] sm:$0xff]  ;;  %971 = vst [vmem:[%s1653_s20 + $0xf8] sm:$0xff] %v795_v9  ;;  %v798_v21 = vmax.f32 %v622_v11, 0.0 }
  0x84   : > { %972 = vst [vmem:[%s1653_s20 + $0x100] sm:$0xff] %v796_v10  ;;  %v799_v22 = vmax.f32 %v623_v12, 0.0  ;;  %v625_v23 = vadd.f32 %v449_v18, %v273_v15  ;;  %v626_v24 = vadd.f32 %v450_v20, %v274_v19  ;;  %v275_v25 = vld [vmem:[%s1623_s28 + $0x138] sm:$0xff]  ;;  %v276_v27 = vld [vmem:[%s1623_s28 + $0x140] sm:$0xff]  ;;  %v277_v31 = vld [vmem:[%s1623_s28 + $0x148] sm:$0xff] }
  0x85   : > { %v451_v26 = vld [vmem:[%s1631_s24 + $0x138] sm:$0xff]  ;;  %973 = vst [vmem:[%s1653_s20 + $0x108] sm:$0xff] %v797_v16  ;;  %v800_v28 = vmax.f32 %v624_v17, 0.0  ;;  %v452_v30 = vld [vmem:[%s1631_s24 + $0x140] sm:$0xff]  ;;  %v453_v32 = vld [vmem:[%s1631_s24 + $0x148] sm:$0xff] }
  0x86   : > { %v627_v29 = vadd.f32 %v451_v26, %v275_v25  ;;  %974 = vst [vmem:[%s1653_s20 + $0x110] sm:$0xff] %v798_v21  ;;  %975 = vst [vmem:[%s1653_s20 + $0x118] sm:$0xff] %v799_v22  ;;  %v801_v33 = vmax.f32 %v625_v23, 0.0  ;;  %v802_v34 = vmax.f32 %v626_v24, 0.0  ;;  %v628_v35 = vadd.f32 %v452_v30, %v276_v27  ;;  %v278_v37 = vld [vmem:[%s1623_s28 + $0x150] sm:$0xff]  ;;  %v279_v39 = vld [vmem:[%s1623_s28 + $0x158] sm:$0xff] }
  0x87   : > { %v629_v36 = vadd.f32 %v453_v32, %v277_v31  ;;  %v454_v38 = vld [vmem:[%s1631_s24 + $0x150] sm:$0xff]  ;;  %976 = vst [vmem:[%s1653_s20 + $0x120] sm:$0xff] %v800_v28  ;;  %v455_v42 = vld [vmem:[%s1631_s24 + $0x158] sm:$0xff]  ;;  %v280_v43 = vld [vmem:[%s1623_s28 + $0x160] sm:$0xff] }
  0x88   : > { %v803_v40 = vmax.f32 %v627_v29, 0.0  ;;  %v630_v41 = vadd.f32 %v454_v38, %v278_v37  ;;  %v456_v44 = vld [vmem:[%s1631_s24 + $0x160] sm:$0xff]  ;;  %977 = vst [vmem:[%s1653_s20 + $0x128] sm:$0xff] %v801_v33  ;;  %978 = vst [vmem:[%s1653_s20 + $0x130] sm:$0xff] %v802_v34  ;;  %v804_v45 = vmax.f32 %v628_v35, 0.0  ;;  %v631_v47 = vadd.f32 %v455_v42, %v279_v39  ;;  %v281_v49 = vld [vmem:[%s1623_s28 + $0x168] sm:$0xff] }
  0x89   : > { %v805_v46 = vmax.f32 %v629_v36, 0.0  ;;  %v632_v48 = vadd.f32 %v456_v44, %v280_v43  ;;  %v457_v50 = vld [vmem:[%s1631_s24 + $0x168] sm:$0xff]  ;;  %v282_v51 = vld [vmem:[%s1623_s28 + $0x170] sm:$0xff]  ;;  %v283_v55 = vld [vmem:[%s1623_s28 + $0x178] sm:$0xff] }
  0x8a   : > { %979 = vst [vmem:[%s1653_s20 + $0x138] sm:$0xff] %v803_v40  ;;  %v806_v52 = vmax.f32 %v630_v41, 0.0  ;;  %v633_v53 = vadd.f32 %v457_v50, %v281_v49  ;;  %v458_v54 = vld [vmem:[%s1631_s24 + $0x170] sm:$0xff]  ;;  %v459_v56 = vld [vmem:[%s1631_s24 + $0x178] sm:$0xff]  ;;  %980 = vst [vmem:[%s1653_s20 + $0x140] sm:$0xff] %v804_v45  ;;  %v807_v57 = vmax.f32 %v631_v47, 0.0 }
  0x8b   : > { %981 = vst [vmem:[%s1653_s20 + $0x148] sm:$0xff] %v805_v46  ;;  %v808_v58 = vmax.f32 %v632_v48, 0.0  ;;  %v634_v59 = vadd.f32 %v458_v54, %v282_v51  ;;  %v635_v60 = vadd.f32 %v459_v56, %v283_v55  ;;  %v284_v61 = vld [vmem:[%s1623_s28 + $0x180] sm:$0xff]  ;;  %v285_v63 = vld [vmem:[%s1623_s28 + $0x188] sm:$0xff]  ;;  %v286_v3 = vld [vmem:[%s1623_s28 + $0x190] sm:$0xff] }
  0x8c   : > { %v460_v62 = vld [vmem:[%s1631_s24 + $0x180] sm:$0xff]  ;;  %982 = vst [vmem:[%s1653_s20 + $0x150] sm:$0xff] %v806_v52  ;;  %v809_v0 = vmax.f32 %v633_v53, 0.0  ;;  %v461_v2 = vld [vmem:[%s1631_s24 + $0x188] sm:$0xff]  ;;  %v462_v4 = vld [vmem:[%s1631_s24 + $0x190] sm:$0xff] }
  0x8d   : > { %v636_v1 = vadd.f32 %v460_v62, %v284_v61  ;;  %983 = vst [vmem:[%s1653_s20 + $0x158] sm:$0xff] %v807_v57  ;;  %984 = vst [vmem:[%s1653_s20 + $0x160] sm:$0xff] %v808_v58  ;;  %v810_v5 = vmax.f32 %v634_v59, 0.0  ;;  %v811_v6 = vmax.f32 %v635_v60, 0.0  ;;  %v637_v7 = vadd.f32 %v461_v2, %v285_v63  ;;  %v287_v9 = vld [vmem:[%s1623_s28 + $0x198] sm:$0xff]  ;;  %v288_v11 = vld [vmem:[%s1623_s28 + $0x1a0] sm:$0xff] }
  0x8e   : > { %v638_v8 = vadd.f32 %v462_v4, %v286_v3  ;;  %v463_v10 = vld [vmem:[%s1631_s24 + $0x198] sm:$0xff]  ;;  %985 = vst [vmem:[%s1653_s20 + $0x168] sm:$0xff] %v809_v0  ;;  %v464_v14 = vld [vmem:[%s1631_s24 + $0x1a0] sm:$0xff]  ;;  %v289_v15 = vld [vmem:[%s1623_s28 + $0x1a8] sm:$0xff] }
  0x8f   : > { %v812_v12 = vmax.f32 %v636_v1, 0.0  ;;  %v639_v13 = vadd.f32 %v463_v10, %v287_v9  ;;  %v465_v16 = vld [vmem:[%s1631_s24 + $0x1a8] sm:$0xff]  ;;  %986 = vst [vmem:[%s1653_s20 + $0x170] sm:$0xff] %v810_v5  ;;  %987 = vst [vmem:[%s1653_s20 + $0x178] sm:$0xff] %v811_v6  ;;  %v813_v17 = vmax.f32 %v637_v7, 0.0  ;;  %v640_v19 = vadd.f32 %v464_v14, %v288_v11  ;;  %v290_v21 = vld [vmem:[%s1623_s28 + $0x1b0] sm:$0xff] }
  0x90   : > { %v814_v18 = vmax.f32 %v638_v8, 0.0  ;;  %v641_v20 = vadd.f32 %v465_v16, %v289_v15  ;;  %v466_v22 = vld [vmem:[%s1631_s24 + $0x1b0] sm:$0xff]  ;;  %v291_v23 = vld [vmem:[%s1623_s28 + $0x1b8] sm:$0xff]  ;;  %v292_v27 = vld [vmem:[%s1623_s28 + $0x1c0] sm:$0xff] }
  0x91   : > { %988 = vst [vmem:[%s1653_s20 + $0x180] sm:$0xff] %v812_v12  ;;  %v815_v24 = vmax.f32 %v639_v13, 0.0  ;;  %v642_v25 = vadd.f32 %v466_v22, %v290_v21  ;;  %v467_v26 = vld [vmem:[%s1631_s24 + $0x1b8] sm:$0xff]  ;;  %v468_v28 = vld [vmem:[%s1631_s24 + $0x1c0] sm:$0xff]  ;;  %989 = vst [vmem:[%s1653_s20 + $0x188] sm:$0xff] %v813_v17  ;;  %v816_v29 = vmax.f32 %v640_v19, 0.0 }
  0x92   : > { %990 = vst [vmem:[%s1653_s20 + $0x190] sm:$0xff] %v814_v18  ;;  %v817_v30 = vmax.f32 %v641_v20, 0.0  ;;  %v643_v31 = vadd.f32 %v467_v26, %v291_v23  ;;  %v644_v32 = vadd.f32 %v468_v28, %v292_v27  ;;  %v293_v33 = vld [vmem:[%s1623_s28 + $0x1c8] sm:$0xff]  ;;  %v294_v35 = vld [vmem:[%s1623_s28 + $0x1d0] sm:$0xff]  ;;  %v295_v39 = vld [vmem:[%s1623_s28 + $0x1d8] sm:$0xff] }
  0x93   : > { %v469_v34 = vld [vmem:[%s1631_s24 + $0x1c8] sm:$0xff]  ;;  %991 = vst [vmem:[%s1653_s20 + $0x198] sm:$0xff] %v815_v24  ;;  %v818_v36 = vmax.f32 %v642_v25, 0.0  ;;  %v470_v38 = vld [vmem:[%s1631_s24 + $0x1d0] sm:$0xff]  ;;  %v471_v40 = vld [vmem:[%s1631_s24 + $0x1d8] sm:$0xff] }
  0x94   : > { %v645_v37 = vadd.f32 %v469_v34, %v293_v33  ;;  %992 = vst [vmem:[%s1653_s20 + $0x1a0] sm:$0xff] %v816_v29  ;;  %993 = vst [vmem:[%s1653_s20 + $0x1a8] sm:$0xff] %v817_v30  ;;  %v819_v41 = vmax.f32 %v643_v31, 0.0  ;;  %v820_v42 = vmax.f32 %v644_v32, 0.0  ;;  %v646_v43 = vadd.f32 %v470_v38, %v294_v35  ;;  %v296_v45 = vld [vmem:[%s1623_s28 + $0x1e0] sm:$0xff]  ;;  %v297_v47 = vld [vmem:[%s1623_s28 + $0x1e8] sm:$0xff] }
  0x95   : > { %v647_v44 = vadd.f32 %v471_v40, %v295_v39  ;;  %v472_v46 = vld [vmem:[%s1631_s24 + $0x1e0] sm:$0xff]  ;;  %994 = vst [vmem:[%s1653_s20 + $0x1b0] sm:$0xff] %v818_v36  ;;  %v473_v50 = vld [vmem:[%s1631_s24 + $0x1e8] sm:$0xff]  ;;  %v298_v51 = vld [vmem:[%s1623_s28 + $0x1f0] sm:$0xff] }
  0x96   : > { %v821_v48 = vmax.f32 %v645_v37, 0.0  ;;  %v648_v49 = vadd.f32 %v472_v46, %v296_v45  ;;  %v474_v52 = vld [vmem:[%s1631_s24 + $0x1f0] sm:$0xff]  ;;  %995 = vst [vmem:[%s1653_s20 + $0x1b8] sm:$0xff] %v819_v41  ;;  %996 = vst [vmem:[%s1653_s20 + $0x1c0] sm:$0xff] %v820_v42  ;;  %v822_v53 = vmax.f32 %v646_v43, 0.0  ;;  %v649_v55 = vadd.f32 %v473_v50, %v297_v47  ;;  %v299_v57 = vld [vmem:[%s1623_s28 + $0x1f8] sm:$0xff] }
  0x97   : > { %v823_v54 = vmax.f32 %v647_v44, 0.0  ;;  %v650_v56 = vadd.f32 %v474_v52, %v298_v51  ;;  %v475_v58 = vld [vmem:[%s1631_s24 + $0x1f8] sm:$0xff]  ;;  %v300_v59 = vld [vmem:[%s1623_s28 + $0x200] sm:$0xff]  ;;  %v301_v63 = vld [vmem:[%s1623_s28 + $0x208] sm:$0xff] }
  0x98   : > { %997 = vst [vmem:[%s1653_s20 + $0x1c8] sm:$0xff] %v821_v48  ;;  %v824_v60 = vmax.f32 %v648_v49, 0.0  ;;  %v651_v61 = vadd.f32 %v475_v58, %v299_v57  ;;  %v476_v62 = vld [vmem:[%s1631_s24 + $0x200] sm:$0xff]  ;;  %v477_v0 = vld [vmem:[%s1631_s24 + $0x208] sm:$0xff]  ;;  %998 = vst [vmem:[%s1653_s20 + $0x1d0] sm:$0xff] %v822_v53  ;;  %v825_v1 = vmax.f32 %v649_v55, 0.0 }
  0x99   : > { %999 = vst [vmem:[%s1653_s20 + $0x1d8] sm:$0xff] %v823_v54  ;;  %v826_v2 = vmax.f32 %v650_v56, 0.0  ;;  %v652_v3 = vadd.f32 %v476_v62, %v300_v59  ;;  %v653_v4 = vadd.f32 %v477_v0, %v301_v63  ;;  %v302_v5 = vld [vmem:[%s1623_s28 + $0x210] sm:$0xff]  ;;  %v303_v7 = vld [vmem:[%s1623_s28 + $0x218] sm:$0xff]  ;;  %v304_v11 = vld [vmem:[%s1623_s28 + $0x220] sm:$0xff] }
  0x9a   : > { %v478_v6 = vld [vmem:[%s1631_s24 + $0x210] sm:$0xff]  ;;  %1000 = vst [vmem:[%s1653_s20 + $0x1e0] sm:$0xff] %v824_v60  ;;  %v827_v8 = vmax.f32 %v651_v61, 0.0  ;;  %v479_v10 = vld [vmem:[%s1631_s24 + $0x218] sm:$0xff]  ;;  %v480_v12 = vld [vmem:[%s1631_s24 + $0x220] sm:$0xff] }
  0x9b   : > { %v654_v9 = vadd.f32 %v478_v6, %v302_v5  ;;  %1001 = vst [vmem:[%s1653_s20 + $0x1e8] sm:$0xff] %v825_v1  ;;  %1002 = vst [vmem:[%s1653_s20 + $0x1f0] sm:$0xff] %v826_v2  ;;  %v828_v13 = vmax.f32 %v652_v3, 0.0  ;;  %v829_v14 = vmax.f32 %v653_v4, 0.0  ;;  %v655_v15 = vadd.f32 %v479_v10, %v303_v7  ;;  %v305_v17 = vld [vmem:[%s1623_s28 + $0x228] sm:$0xff]  ;;  %v306_v19 = vld [vmem:[%s1623_s28 + $0x230] sm:$0xff] }
  0x9c   : > { %v656_v16 = vadd.f32 %v480_v12, %v304_v11  ;;  %v481_v18 = vld [vmem:[%s1631_s24 + $0x228] sm:$0xff]  ;;  %1003 = vst [vmem:[%s1653_s20 + $0x1f8] sm:$0xff] %v827_v8  ;;  %v482_v22 = vld [vmem:[%s1631_s24 + $0x230] sm:$0xff]  ;;  %v307_v23 = vld [vmem:[%s1623_s28 + $0x238] sm:$0xff] }
  0x9d   : > { %v830_v20 = vmax.f32 %v654_v9, 0.0  ;;  %v657_v21 = vadd.f32 %v481_v18, %v305_v17  ;;  %v483_v24 = vld [vmem:[%s1631_s24 + $0x238] sm:$0xff]  ;;  %1004 = vst [vmem:[%s1653_s20 + $0x200] sm:$0xff] %v828_v13  ;;  %1005 = vst [vmem:[%s1653_s20 + $0x208] sm:$0xff] %v829_v14  ;;  %v831_v25 = vmax.f32 %v655_v15, 0.0  ;;  %v658_v27 = vadd.f32 %v482_v22, %v306_v19  ;;  %v308_v29 = vld [vmem:[%s1623_s28 + $0x240] sm:$0xff] }
  0x9e   : > { %v832_v26 = vmax.f32 %v656_v16, 0.0  ;;  %v659_v28 = vadd.f32 %v483_v24, %v307_v23  ;;  %v484_v30 = vld [vmem:[%s1631_s24 + $0x240] sm:$0xff]  ;;  %v309_v31 = vld [vmem:[%s1623_s28 + $0x248] sm:$0xff]  ;;  %v310_v35 = vld [vmem:[%s1623_s28 + $0x250] sm:$0xff] }
  0x9f   : > { %1006 = vst [vmem:[%s1653_s20 + $0x210] sm:$0xff] %v830_v20  ;;  %v833_v32 = vmax.f32 %v657_v21, 0.0  ;;  %v660_v33 = vadd.f32 %v484_v30, %v308_v29  ;;  %v485_v34 = vld [vmem:[%s1631_s24 + $0x248] sm:$0xff]  ;;  %v486_v36 = vld [vmem:[%s1631_s24 + $0x250] sm:$0xff]  ;;  %1007 = vst [vmem:[%s1653_s20 + $0x218] sm:$0xff] %v831_v25  ;;  %v834_v37 = vmax.f32 %v658_v27, 0.0 }
  0xa0   : > { %1008 = vst [vmem:[%s1653_s20 + $0x220] sm:$0xff] %v832_v26  ;;  %v835_v38 = vmax.f32 %v659_v28, 0.0  ;;  %v661_v39 = vadd.f32 %v485_v34, %v309_v31  ;;  %v662_v40 = vadd.f32 %v486_v36, %v310_v35  ;;  %v311_v41 = vld [vmem:[%s1623_s28 + $0x258] sm:$0xff]  ;;  %v312_v43 = vld [vmem:[%s1623_s28 + $0x260] sm:$0xff]  ;;  %v313_v47 = vld [vmem:[%s1623_s28 + $0x268] sm:$0xff] }
  0xa1   : > { %v487_v42 = vld [vmem:[%s1631_s24 + $0x258] sm:$0xff]  ;;  %1009 = vst [vmem:[%s1653_s20 + $0x228] sm:$0xff] %v833_v32  ;;  %v836_v44 = vmax.f32 %v660_v33, 0.0  ;;  %v488_v46 = vld [vmem:[%s1631_s24 + $0x260] sm:$0xff]  ;;  %v489_v48 = vld [vmem:[%s1631_s24 + $0x268] sm:$0xff] }
  0xa2   : > { %v663_v45 = vadd.f32 %v487_v42, %v311_v41  ;;  %1010 = vst [vmem:[%s1653_s20 + $0x230] sm:$0xff] %v834_v37  ;;  %1011 = vst [vmem:[%s1653_s20 + $0x238] sm:$0xff] %v835_v38  ;;  %v837_v49 = vmax.f32 %v661_v39, 0.0  ;;  %v838_v50 = vmax.f32 %v662_v40, 0.0  ;;  %v664_v51 = vadd.f32 %v488_v46, %v312_v43  ;;  %v314_v53 = vld [vmem:[%s1623_s28 + $0x270] sm:$0xff]  ;;  %v315_v55 = vld [vmem:[%s1623_s28 + $0x278] sm:$0xff] }
  0xa3   : > { %v665_v52 = vadd.f32 %v489_v48, %v313_v47  ;;  %v490_v54 = vld [vmem:[%s1631_s24 + $0x270] sm:$0xff]  ;;  %1012 = vst [vmem:[%s1653_s20 + $0x240] sm:$0xff] %v836_v44  ;;  %v491_v58 = vld [vmem:[%s1631_s24 + $0x278] sm:$0xff]  ;;  %v316_v59 = vld [vmem:[%s1623_s28 + $0x280] sm:$0xff] }
  0xa4   : > { %v839_v56 = vmax.f32 %v663_v45, 0.0  ;;  %v666_v57 = vadd.f32 %v490_v54, %v314_v53  ;;  %v492_v60 = vld [vmem:[%s1631_s24 + $0x280] sm:$0xff]  ;;  %1013 = vst [vmem:[%s1653_s20 + $0x248] sm:$0xff] %v837_v49  ;;  %1014 = vst [vmem:[%s1653_s20 + $0x250] sm:$0xff] %v838_v50  ;;  %v840_v61 = vmax.f32 %v664_v51, 0.0  ;;  %v667_v63 = vadd.f32 %v491_v58, %v315_v55  ;;  %v317_v1 = vld [vmem:[%s1623_s28 + $0x288] sm:$0xff] }
  0xa5   : > { %v841_v62 = vmax.f32 %v665_v52, 0.0  ;;  %v668_v0 = vadd.f32 %v492_v60, %v316_v59  ;;  %v493_v2 = vld [vmem:[%s1631_s24 + $0x288] sm:$0xff]  ;;  %v318_v3 = vld [vmem:[%s1623_s28 + $0x290] sm:$0xff]  ;;  %v319_v7 = vld [vmem:[%s1623_s28 + $0x298] sm:$0xff] }
  0xa6   : > { %1015 = vst [vmem:[%s1653_s20 + $0x258] sm:$0xff] %v839_v56  ;;  %v842_v4 = vmax.f32 %v666_v57, 0.0  ;;  %v669_v5 = vadd.f32 %v493_v2, %v317_v1  ;;  %v494_v6 = vld [vmem:[%s1631_s24 + $0x290] sm:$0xff]  ;;  %v495_v8 = vld [vmem:[%s1631_s24 + $0x298] sm:$0xff]  ;;  %1016 = vst [vmem:[%s1653_s20 + $0x260] sm:$0xff] %v840_v61  ;;  %v843_v9 = vmax.f32 %v667_v63, 0.0 }
  0xa7   : > { %1017 = vst [vmem:[%s1653_s20 + $0x268] sm:$0xff] %v841_v62  ;;  %v844_v10 = vmax.f32 %v668_v0, 0.0  ;;  %v670_v11 = vadd.f32 %v494_v6, %v318_v3  ;;  %v671_v12 = vadd.f32 %v495_v8, %v319_v7  ;;  %v320_v13 = vld [vmem:[%s1623_s28 + $0x2a0] sm:$0xff]  ;;  %v321_v15 = vld [vmem:[%s1623_s28 + $0x2a8] sm:$0xff]  ;;  %v322_v19 = vld [vmem:[%s1623_s28 + $0x2b0] sm:$0xff] }
  0xa8   : > { %v496_v14 = vld [vmem:[%s1631_s24 + $0x2a0] sm:$0xff]  ;;  %1018 = vst [vmem:[%s1653_s20 + $0x270] sm:$0xff] %v842_v4  ;;  %v845_v16 = vmax.f32 %v669_v5, 0.0  ;;  %v497_v18 = vld [vmem:[%s1631_s24 + $0x2a8] sm:$0xff]  ;;  %v498_v20 = vld [vmem:[%s1631_s24 + $0x2b0] sm:$0xff] }
  0xa9   : > { %v672_v17 = vadd.f32 %v496_v14, %v320_v13  ;;  %1019 = vst [vmem:[%s1653_s20 + $0x278] sm:$0xff] %v843_v9  ;;  %1020 = vst [vmem:[%s1653_s20 + $0x280] sm:$0xff] %v844_v10  ;;  %v846_v21 = vmax.f32 %v670_v11, 0.0  ;;  %v847_v22 = vmax.f32 %v671_v12, 0.0  ;;  %v673_v23 = vadd.f32 %v497_v18, %v321_v15  ;;  %v323_v25 = vld [vmem:[%s1623_s28 + $0x2b8] sm:$0xff]  ;;  %v324_v27 = vld [vmem:[%s1623_s28 + $0x2c0] sm:$0xff] }
  0xaa   : > { %v674_v24 = vadd.f32 %v498_v20, %v322_v19  ;;  %v499_v26 = vld [vmem:[%s1631_s24 + $0x2b8] sm:$0xff]  ;;  %1021 = vst [vmem:[%s1653_s20 + $0x288] sm:$0xff] %v845_v16  ;;  %v500_v30 = vld [vmem:[%s1631_s24 + $0x2c0] sm:$0xff]  ;;  %v325_v31 = vld [vmem:[%s1623_s28 + $0x2c8] sm:$0xff] }
  0xab   : > { %v848_v28 = vmax.f32 %v672_v17, 0.0  ;;  %v675_v29 = vadd.f32 %v499_v26, %v323_v25  ;;  %v501_v32 = vld [vmem:[%s1631_s24 + $0x2c8] sm:$0xff]  ;;  %1022 = vst [vmem:[%s1653_s20 + $0x290] sm:$0xff] %v846_v21  ;;  %1023 = vst [vmem:[%s1653_s20 + $0x298] sm:$0xff] %v847_v22  ;;  %v849_v33 = vmax.f32 %v673_v23, 0.0  ;;  %v676_v35 = vadd.f32 %v500_v30, %v324_v27  ;;  %v326_v37 = vld [vmem:[%s1623_s28 + $0x2d0] sm:$0xff] }
  0xac   : > { %v850_v34 = vmax.f32 %v674_v24, 0.0  ;;  %v677_v36 = vadd.f32 %v501_v32, %v325_v31  ;;  %v502_v38 = vld [vmem:[%s1631_s24 + $0x2d0] sm:$0xff]  ;;  %v327_v39 = vld [vmem:[%s1623_s28 + $0x2d8] sm:$0xff]  ;;  %v328_v43 = vld [vmem:[%s1623_s28 + $0x2e0] sm:$0xff] }
  0xad   : > { %1024 = vst [vmem:[%s1653_s20 + $0x2a0] sm:$0xff] %v848_v28  ;;  %v851_v40 = vmax.f32 %v675_v29, 0.0  ;;  %v678_v41 = vadd.f32 %v502_v38, %v326_v37  ;;  %v503_v42 = vld [vmem:[%s1631_s24 + $0x2d8] sm:$0xff]  ;;  %v504_v44 = vld [vmem:[%s1631_s24 + $0x2e0] sm:$0xff]  ;;  %1025 = vst [vmem:[%s1653_s20 + $0x2a8] sm:$0xff] %v849_v33  ;;  %v852_v45 = vmax.f32 %v676_v35, 0.0 }
  0xae   : > { %1026 = vst [vmem:[%s1653_s20 + $0x2b0] sm:$0xff] %v850_v34  ;;  %v853_v46 = vmax.f32 %v677_v36, 0.0  ;;  %v679_v47 = vadd.f32 %v503_v42, %v327_v39  ;;  %v680_v48 = vadd.f32 %v504_v44, %v328_v43  ;;  %v329_v49 = vld [vmem:[%s1623_s28 + $0x2e8] sm:$0xff]  ;;  %v330_v51 = vld [vmem:[%s1623_s28 + $0x2f0] sm:$0xff]  ;;  %v331_v55 = vld [vmem:[%s1623_s28 + $0x2f8] sm:$0xff] }
  0xaf   : > { %v505_v50 = vld [vmem:[%s1631_s24 + $0x2e8] sm:$0xff]  ;;  %1027 = vst [vmem:[%s1653_s20 + $0x2b8] sm:$0xff] %v851_v40  ;;  %v854_v52 = vmax.f32 %v678_v41, 0.0  ;;  %v506_v54 = vld [vmem:[%s1631_s24 + $0x2f0] sm:$0xff]  ;;  %v507_v56 = vld [vmem:[%s1631_s24 + $0x2f8] sm:$0xff] }
  0xb0   : > { %v681_v53 = vadd.f32 %v505_v50, %v329_v49  ;;  %1028 = vst [vmem:[%s1653_s20 + $0x2c0] sm:$0xff] %v852_v45  ;;  %1029 = vst [vmem:[%s1653_s20 + $0x2c8] sm:$0xff] %v853_v46  ;;  %v855_v57 = vmax.f32 %v679_v47, 0.0  ;;  %v856_v58 = vmax.f32 %v680_v48, 0.0  ;;  %v682_v59 = vadd.f32 %v506_v54, %v330_v51  ;;  %v332_v61 = vld [vmem:[%s1623_s28 + $0x300] sm:$0xff]  ;;  %v333_v63 = vld [vmem:[%s1623_s28 + $0x308] sm:$0xff] }
  0xb1   : > { %v683_v60 = vadd.f32 %v507_v56, %v331_v55  ;;  %v508_v62 = vld [vmem:[%s1631_s24 + $0x300] sm:$0xff]  ;;  %1030 = vst [vmem:[%s1653_s20 + $0x2d0] sm:$0xff] %v854_v52  ;;  %v509_v2 = vld [vmem:[%s1631_s24 + $0x308] sm:$0xff]  ;;  %v334_v3 = vld [vmem:[%s1623_s28 + $0x310] sm:$0xff] }
  0xb2   : > { %v857_v0 = vmax.f32 %v681_v53, 0.0  ;;  %v684_v1 = vadd.f32 %v508_v62, %v332_v61  ;;  %v510_v4 = vld [vmem:[%s1631_s24 + $0x310] sm:$0xff]  ;;  %1031 = vst [vmem:[%s1653_s20 + $0x2d8] sm:$0xff] %v855_v57  ;;  %1032 = vst [vmem:[%s1653_s20 + $0x2e0] sm:$0xff] %v856_v58  ;;  %v858_v5 = vmax.f32 %v682_v59, 0.0  ;;  %v685_v7 = vadd.f32 %v509_v2, %v333_v63  ;;  %v335_v9 = vld [vmem:[%s1623_s28 + $0x318] sm:$0xff] }
  0xb3   : > { %v859_v6 = vmax.f32 %v683_v60, 0.0  ;;  %v686_v8 = vadd.f32 %v510_v4, %v334_v3  ;;  %v511_v10 = vld [vmem:[%s1631_s24 + $0x318] sm:$0xff]  ;;  %v336_v11 = vld [vmem:[%s1623_s28 + $0x320] sm:$0xff]  ;;  %v337_v15 = vld [vmem:[%s1623_s28 + $0x328] sm:$0xff] }
  0xb4   : > { %1033 = vst [vmem:[%s1653_s20 + $0x2e8] sm:$0xff] %v857_v0  ;;  %v860_v12 = vmax.f32 %v684_v1, 0.0  ;;  %v687_v13 = vadd.f32 %v511_v10, %v335_v9  ;;  %v512_v14 = vld [vmem:[%s1631_s24 + $0x320] sm:$0xff]  ;;  %v513_v16 = vld [vmem:[%s1631_s24 + $0x328] sm:$0xff]  ;;  %1034 = vst [vmem:[%s1653_s20 + $0x2f0] sm:$0xff] %v858_v5  ;;  %v861_v17 = vmax.f32 %v685_v7, 0.0 }
  0xb5   : > { %1035 = vst [vmem:[%s1653_s20 + $0x2f8] sm:$0xff] %v859_v6  ;;  %v862_v18 = vmax.f32 %v686_v8, 0.0  ;;  %v688_v19 = vadd.f32 %v512_v14, %v336_v11  ;;  %v689_v20 = vadd.f32 %v513_v16, %v337_v15  ;;  %v338_v21 = vld [vmem:[%s1623_s28 + $0x330] sm:$0xff]  ;;  %v339_v23 = vld [vmem:[%s1623_s28 + $0x338] sm:$0xff]  ;;  %v340_v27 = vld [vmem:[%s1623_s28 + $0x340] sm:$0xff] }
  0xb6   : > { %v514_v22 = vld [vmem:[%s1631_s24 + $0x330] sm:$0xff]  ;;  %1036 = vst [vmem:[%s1653_s20 + $0x300] sm:$0xff] %v860_v12  ;;  %v863_v24 = vmax.f32 %v687_v13, 0.0  ;;  %v515_v26 = vld [vmem:[%s1631_s24 + $0x338] sm:$0xff]  ;;  %v516_v28 = vld [vmem:[%s1631_s24 + $0x340] sm:$0xff] }
  0xb7   : > { %v690_v25 = vadd.f32 %v514_v22, %v338_v21  ;;  %1037 = vst [vmem:[%s1653_s20 + $0x308] sm:$0xff] %v861_v17  ;;  %1038 = vst [vmem:[%s1653_s20 + $0x310] sm:$0xff] %v862_v18  ;;  %v864_v29 = vmax.f32 %v688_v19, 0.0  ;;  %v865_v30 = vmax.f32 %v689_v20, 0.0  ;;  %v691_v31 = vadd.f32 %v515_v26, %v339_v23  ;;  %v341_v33 = vld [vmem:[%s1623_s28 + $0x348] sm:$0xff]  ;;  %v342_v35 = vld [vmem:[%s1623_s28 + $0x350] sm:$0xff] }
  0xb8   : > { %v692_v32 = vadd.f32 %v516_v28, %v340_v27  ;;  %v517_v34 = vld [vmem:[%s1631_s24 + $0x348] sm:$0xff]  ;;  %1039 = vst [vmem:[%s1653_s20 + $0x318] sm:$0xff] %v863_v24  ;;  %v518_v38 = vld [vmem:[%s1631_s24 + $0x350] sm:$0xff]  ;;  %v343_v39 = vld [vmem:[%s1623_s28 + $0x358] sm:$0xff] }
  0xb9   : > { %v866_v36 = vmax.f32 %v690_v25, 0.0  ;;  %v693_v37 = vadd.f32 %v517_v34, %v341_v33  ;;  %v519_v40 = vld [vmem:[%s1631_s24 + $0x358] sm:$0xff]  ;;  %1040 = vst [vmem:[%s1653_s20 + $0x320] sm:$0xff] %v864_v29  ;;  %1041 = vst [vmem:[%s1653_s20 + $0x328] sm:$0xff] %v865_v30  ;;  %v867_v41 = vmax.f32 %v691_v31, 0.0  ;;  %v694_v43 = vadd.f32 %v518_v38, %v342_v35  ;;  %v344_v45 = vld [vmem:[%s1623_s28 + $0x360] sm:$0xff] }
  0xba   : > { %v868_v42 = vmax.f32 %v692_v32, 0.0  ;;  %v695_v44 = vadd.f32 %v519_v40, %v343_v39  ;;  %v520_v46 = vld [vmem:[%s1631_s24 + $0x360] sm:$0xff]  ;;  %v345_v47 = vld [vmem:[%s1623_s28 + $0x368] sm:$0xff]  ;;  %v346_v51 = vld [vmem:[%s1623_s28 + $0x370] sm:$0xff] }
  0xbb   : > { %1042 = vst [vmem:[%s1653_s20 + $0x330] sm:$0xff] %v866_v36  ;;  %v869_v48 = vmax.f32 %v693_v37, 0.0  ;;  %v696_v49 = vadd.f32 %v520_v46, %v344_v45  ;;  %v521_v50 = vld [vmem:[%s1631_s24 + $0x368] sm:$0xff]  ;;  %v522_v52 = vld [vmem:[%s1631_s24 + $0x370] sm:$0xff]  ;;  %1043 = vst [vmem:[%s1653_s20 + $0x338] sm:$0xff] %v867_v41  ;;  %v870_v53 = vmax.f32 %v694_v43, 0.0 }
  0xbc   : > { %1044 = vst [vmem:[%s1653_s20 + $0x340] sm:$0xff] %v868_v42  ;;  %v871_v54 = vmax.f32 %v695_v44, 0.0  ;;  %v697_v55 = vadd.f32 %v521_v50, %v345_v47  ;;  %v698_v56 = vadd.f32 %v522_v52, %v346_v51  ;;  %v347_v57 = vld [vmem:[%s1623_s28 + $0x378] sm:$0xff]  ;;  %v348_v59 = vld [vmem:[%s1623_s28 + $0x380] sm:$0xff]  ;;  %v349_v63 = vld [vmem:[%s1623_s28 + $0x388] sm:$0xff] }
  0xbd   : > { %v523_v58 = vld [vmem:[%s1631_s24 + $0x378] sm:$0xff]  ;;  %1045 = vst [vmem:[%s1653_s20 + $0x348] sm:$0xff] %v869_v48  ;;  %v872_v60 = vmax.f32 %v696_v49, 0.0  ;;  %v524_v62 = vld [vmem:[%s1631_s24 + $0x380] sm:$0xff]  ;;  %v525_v0 = vld [vmem:[%s1631_s24 + $0x388] sm:$0xff] }
  0xbe   : > { %v699_v61 = vadd.f32 %v523_v58, %v347_v57  ;;  %1046 = vst [vmem:[%s1653_s20 + $0x350] sm:$0xff] %v870_v53  ;;  %1047 = vst [vmem:[%s1653_s20 + $0x358] sm:$0xff] %v871_v54  ;;  %v873_v1 = vmax.f32 %v697_v55, 0.0  ;;  %v874_v2 = vmax.f32 %v698_v56, 0.0  ;;  %v700_v3 = vadd.f32 %v524_v62, %v348_v59  ;;  %v350_v5 = vld [vmem:[%s1623_s28 + $0x390] sm:$0xff]  ;;  %v351_v7 = vld [vmem:[%s1623_s28 + $0x398] sm:$0xff] }
  0xbf   : > { %v701_v4 = vadd.f32 %v525_v0, %v349_v63  ;;  %v526_v6 = vld [vmem:[%s1631_s24 + $0x390] sm:$0xff]  ;;  %1048 = vst [vmem:[%s1653_s20 + $0x360] sm:$0xff] %v872_v60  ;;  %v527_v10 = vld [vmem:[%s1631_s24 + $0x398] sm:$0xff]  ;;  %v352_v11 = vld [vmem:[%s1623_s28 + $0x3a0] sm:$0xff] }
  0xc0   : > { %v875_v8 = vmax.f32 %v699_v61, 0.0  ;;  %v702_v9 = vadd.f32 %v526_v6, %v350_v5  ;;  %v528_v12 = vld [vmem:[%s1631_s24 + $0x3a0] sm:$0xff]  ;;  %1049 = vst [vmem:[%s1653_s20 + $0x368] sm:$0xff] %v873_v1  ;;  %1050 = vst [vmem:[%s1653_s20 + $0x370] sm:$0xff] %v874_v2  ;;  %v876_v13 = vmax.f32 %v700_v3, 0.0  ;;  %v703_v15 = vadd.f32 %v527_v10, %v351_v7  ;;  %v353_v17 = vld [vmem:[%s1623_s28 + $0x3a8] sm:$0xff] }
  0xc1   : > { %v877_v14 = vmax.f32 %v701_v4, 0.0  ;;  %v704_v16 = vadd.f32 %v528_v12, %v352_v11  ;;  %v529_v18 = vld [vmem:[%s1631_s24 + $0x3a8] sm:$0xff]  ;;  %v354_v19 = vld [vmem:[%s1623_s28 + $0x3b0] sm:$0xff]  ;;  %v355_v23 = vld [vmem:[%s1623_s28 + $0x3b8] sm:$0xff] }
  0xc2   : > { %1051 = vst [vmem:[%s1653_s20 + $0x378] sm:$0xff] %v875_v8  ;;  %v878_v20 = vmax.f32 %v702_v9, 0.0  ;;  %v705_v21 = vadd.f32 %v529_v18, %v353_v17  ;;  %v530_v22 = vld [vmem:[%s1631_s24 + $0x3b0] sm:$0xff]  ;;  %v531_v24 = vld [vmem:[%s1631_s24 + $0x3b8] sm:$0xff]  ;;  %1052 = vst [vmem:[%s1653_s20 + $0x380] sm:$0xff] %v876_v13  ;;  %v879_v25 = vmax.f32 %v703_v15, 0.0 }
  0xc3   : > { %1053 = vst [vmem:[%s1653_s20 + $0x388] sm:$0xff] %v877_v14  ;;  %v880_v26 = vmax.f32 %v704_v16, 0.0  ;;  %v706_v27 = vadd.f32 %v530_v22, %v354_v19  ;;  %v707_v28 = vadd.f32 %v531_v24, %v355_v23  ;;  %v356_v29 = vld [vmem:[%s1623_s28 + $0x3c0] sm:$0xff]  ;;  %v357_v31 = vld [vmem:[%s1623_s28 + $0x3c8] sm:$0xff]  ;;  %v358_v35 = vld [vmem:[%s1623_s28 + $0x3d0] sm:$0xff] }
  0xc4   : > { %v532_v30 = vld [vmem:[%s1631_s24 + $0x3c0] sm:$0xff]  ;;  %1054 = vst [vmem:[%s1653_s20 + $0x390] sm:$0xff] %v878_v20  ;;  %v881_v32 = vmax.f32 %v705_v21, 0.0  ;;  %v533_v34 = vld [vmem:[%s1631_s24 + $0x3c8] sm:$0xff]  ;;  %v534_v36 = vld [vmem:[%s1631_s24 + $0x3d0] sm:$0xff] }
  0xc5   : > { %v708_v33 = vadd.f32 %v532_v30, %v356_v29  ;;  %1055 = vst [vmem:[%s1653_s20 + $0x398] sm:$0xff] %v879_v25  ;;  %1056 = vst [vmem:[%s1653_s20 + $0x3a0] sm:$0xff] %v880_v26  ;;  %v882_v37 = vmax.f32 %v706_v27, 0.0  ;;  %v883_v38 = vmax.f32 %v707_v28, 0.0  ;;  %v709_v39 = vadd.f32 %v533_v34, %v357_v31  ;;  %v359_v41 = vld [vmem:[%s1623_s28 + $0x3d8] sm:$0xff]  ;;  %v360_v43 = vld [vmem:[%s1623_s28 + $0x3e0] sm:$0xff] }
  0xc6   : > { %v710_v40 = vadd.f32 %v534_v36, %v358_v35  ;;  %v535_v42 = vld [vmem:[%s1631_s24 + $0x3d8] sm:$0xff]  ;;  %1057 = vst [vmem:[%s1653_s20 + $0x3a8] sm:$0xff] %v881_v32  ;;  %v536_v46 = vld [vmem:[%s1631_s24 + $0x3e0] sm:$0xff]  ;;  %v361_v47 = vld [vmem:[%s1623_s28 + $0x3e8] sm:$0xff] }
  0xc7   : > { %v884_v44 = vmax.f32 %v708_v33, 0.0  ;;  %v711_v45 = vadd.f32 %v535_v42, %v359_v41  ;;  %v537_v48 = vld [vmem:[%s1631_s24 + $0x3e8] sm:$0xff]  ;;  %1058 = vst [vmem:[%s1653_s20 + $0x3b0] sm:$0xff] %v882_v37  ;;  %1059 = vst [vmem:[%s1653_s20 + $0x3b8] sm:$0xff] %v883_v38  ;;  %v885_v49 = vmax.f32 %v709_v39, 0.0  ;;  %v712_v51 = vadd.f32 %v536_v46, %v360_v43  ;;  %v362_v53 = vld [vmem:[%s1623_s28 + $0x3f0] sm:$0xff] }
  0xc8   : > { %v886_v50 = vmax.f32 %v710_v40, 0.0  ;;  %v713_v52 = vadd.f32 %v537_v48, %v361_v47  ;;  %v538_v54 = vld [vmem:[%s1631_s24 + $0x3f0] sm:$0xff]  ;;  %v363_v55 = vld [vmem:[%s1623_s28 + $0x3f8] sm:$0xff]  ;;  %v364_v59 = vld [vmem:[%s1623_s28 + $0x400] sm:$0xff] }
  0xc9   : > { %1060 = vst [vmem:[%s1653_s20 + $0x3c0] sm:$0xff] %v884_v44  ;;  %v887_v56 = vmax.f32 %v711_v45, 0.0  ;;  %v714_v57 = vadd.f32 %v538_v54, %v362_v53  ;;  %v539_v58 = vld [vmem:[%s1631_s24 + $0x3f8] sm:$0xff]  ;;  %v540_v60 = vld [vmem:[%s1631_s24 + $0x400] sm:$0xff]  ;;  %1061 = vst [vmem:[%s1653_s20 + $0x3c8] sm:$0xff] %v885_v49  ;;  %v888_v61 = vmax.f32 %v712_v51, 0.0 }
  0xca   : > { %1062 = vst [vmem:[%s1653_s20 + $0x3d0] sm:$0xff] %v886_v50  ;;  %v889_v62 = vmax.f32 %v713_v52, 0.0  ;;  %v715_v63 = vadd.f32 %v539_v58, %v363_v55  ;;  %v716_v0 = vadd.f32 %v540_v60, %v364_v59  ;;  %v365_v1 = vld [vmem:[%s1623_s28 + $0x408] sm:$0xff]  ;;  %v366_v3 = vld [vmem:[%s1623_s28 + $0x410] sm:$0xff]  ;;  %v367_v7 = vld [vmem:[%s1623_s28 + $0x418] sm:$0xff] }
  0xcb   : > { %v541_v2 = vld [vmem:[%s1631_s24 + $0x408] sm:$0xff]  ;;  %1063 = vst [vmem:[%s1653_s20 + $0x3d8] sm:$0xff] %v887_v56  ;;  %v890_v4 = vmax.f32 %v714_v57, 0.0  ;;  %v542_v6 = vld [vmem:[%s1631_s24 + $0x410] sm:$0xff]  ;;  %v543_v8 = vld [vmem:[%s1631_s24 + $0x418] sm:$0xff] }
  0xcc   : > { %v717_v5 = vadd.f32 %v541_v2, %v365_v1  ;;  %1064 = vst [vmem:[%s1653_s20 + $0x3e0] sm:$0xff] %v888_v61  ;;  %1065 = vst [vmem:[%s1653_s20 + $0x3e8] sm:$0xff] %v889_v62  ;;  %v891_v9 = vmax.f32 %v715_v63, 0.0  ;;  %v892_v10 = vmax.f32 %v716_v0, 0.0  ;;  %v718_v11 = vadd.f32 %v542_v6, %v366_v3  ;;  %v368_v13 = vld [vmem:[%s1623_s28 + $0x420] sm:$0xff]  ;;  %v369_v15 = vld [vmem:[%s1623_s28 + $0x428] sm:$0xff] }
  0xcd   : > { %v719_v12 = vadd.f32 %v543_v8, %v367_v7  ;;  %v544_v14 = vld [vmem:[%s1631_s24 + $0x420] sm:$0xff]  ;;  %1066 = vst [vmem:[%s1653_s20 + $0x3f0] sm:$0xff] %v890_v4  ;;  %v545_v18 = vld [vmem:[%s1631_s24 + $0x428] sm:$0xff]  ;;  %v370_v19 = vld [vmem:[%s1623_s28 + $0x430] sm:$0xff] }
  0xce   : > { %v893_v16 = vmax.f32 %v717_v5, 0.0  ;;  %v720_v17 = vadd.f32 %v544_v14, %v368_v13  ;;  %v546_v20 = vld [vmem:[%s1631_s24 + $0x430] sm:$0xff]  ;;  %1067 = vst [vmem:[%s1653_s20 + $0x3f8] sm:$0xff] %v891_v9  ;;  %1068 = vst [vmem:[%s1653_s20 + $0x400] sm:$0xff] %v892_v10  ;;  %v894_v21 = vmax.f32 %v718_v11, 0.0  ;;  %v721_v23 = vadd.f32 %v545_v18, %v369_v15  ;;  %v371_v25 = vld [vmem:[%s1623_s28 + $0x438] sm:$0xff] }
  0xcf   : > { %v895_v22 = vmax.f32 %v719_v12, 0.0  ;;  %v722_v24 = vadd.f32 %v546_v20, %v370_v19  ;;  %v547_v26 = vld [vmem:[%s1631_s24 + $0x438] sm:$0xff]  ;;  %v372_v27 = vld [vmem:[%s1623_s28 + $0x440] sm:$0xff]  ;;  %v373_v31 = vld [vmem:[%s1623_s28 + $0x448] sm:$0xff] }
  0xd0   : > { %1069 = vst [vmem:[%s1653_s20 + $0x408] sm:$0xff] %v893_v16  ;;  %v896_v28 = vmax.f32 %v720_v17, 0.0  ;;  %v723_v29 = vadd.f32 %v547_v26, %v371_v25  ;;  %v548_v30 = vld [vmem:[%s1631_s24 + $0x440] sm:$0xff]  ;;  %v549_v32 = vld [vmem:[%s1631_s24 + $0x448] sm:$0xff]  ;;  %1070 = vst [vmem:[%s1653_s20 + $0x410] sm:$0xff] %v894_v21  ;;  %v897_v33 = vmax.f32 %v721_v23, 0.0 }
  0xd1   : > { %1071 = vst [vmem:[%s1653_s20 + $0x418] sm:$0xff] %v895_v22  ;;  %v898_v34 = vmax.f32 %v722_v24, 0.0  ;;  %v724_v35 = vadd.f32 %v548_v30, %v372_v27  ;;  %v725_v36 = vadd.f32 %v549_v32, %v373_v31  ;;  %v374_v37 = vld [vmem:[%s1623_s28 + $0x450] sm:$0xff]  ;;  %v375_v39 = vld [vmem:[%s1623_s28 + $0x458] sm:$0xff]  ;;  %v376_v43 = vld [vmem:[%s1623_s28 + $0x460] sm:$0xff] }
  0xd2   : > { %v550_v38 = vld [vmem:[%s1631_s24 + $0x450] sm:$0xff]  ;;  %1072 = vst [vmem:[%s1653_s20 + $0x420] sm:$0xff] %v896_v28  ;;  %v899_v40 = vmax.f32 %v723_v29, 0.0  ;;  %v551_v42 = vld [vmem:[%s1631_s24 + $0x458] sm:$0xff]  ;;  %v552_v44 = vld [vmem:[%s1631_s24 + $0x460] sm:$0xff] }
  0xd3   : > { %v726_v41 = vadd.f32 %v550_v38, %v374_v37  ;;  %1073 = vst [vmem:[%s1653_s20 + $0x428] sm:$0xff] %v897_v33  ;;  %1074 = vst [vmem:[%s1653_s20 + $0x430] sm:$0xff] %v898_v34  ;;  %v900_v45 = vmax.f32 %v724_v35, 0.0  ;;  %v901_v46 = vmax.f32 %v725_v36, 0.0  ;;  %v727_v47 = vadd.f32 %v551_v42, %v375_v39  ;;  %v377_v49 = vld [vmem:[%s1623_s28 + $0x468] sm:$0xff]  ;;  %v378_v51 = vld [vmem:[%s1623_s28 + $0x470] sm:$0xff] }
  0xd4   : > { %v728_v48 = vadd.f32 %v552_v44, %v376_v43  ;;  %v553_v50 = vld [vmem:[%s1631_s24 + $0x468] sm:$0xff]  ;;  %1075 = vst [vmem:[%s1653_s20 + $0x438] sm:$0xff] %v899_v40  ;;  %v554_v54 = vld [vmem:[%s1631_s24 + $0x470] sm:$0xff]  ;;  %v379_v55 = vld [vmem:[%s1623_s28 + $0x478] sm:$0xff] }
  0xd5   : > { %v902_v52 = vmax.f32 %v726_v41, 0.0  ;;  %v729_v53 = vadd.f32 %v553_v50, %v377_v49  ;;  %v555_v56 = vld [vmem:[%s1631_s24 + $0x478] sm:$0xff]  ;;  %1076 = vst [vmem:[%s1653_s20 + $0x440] sm:$0xff] %v900_v45  ;;  %1077 = vst [vmem:[%s1653_s20 + $0x448] sm:$0xff] %v901_v46  ;;  %v903_v57 = vmax.f32 %v727_v47, 0.0  ;;  %v730_v59 = vadd.f32 %v554_v54, %v378_v51  ;;  %v380_v61 = vld [vmem:[%s1623_s28 + $0x480] sm:$0xff] }
  0xd6   : > { %v904_v58 = vmax.f32 %v728_v48, 0.0  ;;  %v731_v60 = vadd.f32 %v555_v56, %v379_v55  ;;  %v556_v62 = vld [vmem:[%s1631_s24 + $0x480] sm:$0xff]  ;;  %v381_v63 = vld [vmem:[%s1623_s28 + $0x488] sm:$0xff]  ;;  %v382_v3 = vld [vmem:[%s1623_s28 + $0x490] sm:$0xff] }
  0xd7   : > { %1078 = vst [vmem:[%s1653_s20 + $0x450] sm:$0xff] %v902_v52  ;;  %v905_v0 = vmax.f32 %v729_v53, 0.0  ;;  %v732_v1 = vadd.f32 %v556_v62, %v380_v61  ;;  %v557_v2 = vld [vmem:[%s1631_s24 + $0x488] sm:$0xff]  ;;  %v558_v4 = vld [vmem:[%s1631_s24 + $0x490] sm:$0xff]  ;;  %1079 = vst [vmem:[%s1653_s20 + $0x458] sm:$0xff] %v903_v57  ;;  %v906_v5 = vmax.f32 %v730_v59, 0.0 }
  0xd8   : > { %1080 = vst [vmem:[%s1653_s20 + $0x460] sm:$0xff] %v904_v58  ;;  %v907_v6 = vmax.f32 %v731_v60, 0.0  ;;  %v733_v7 = vadd.f32 %v557_v2, %v381_v63  ;;  %v734_v8 = vadd.f32 %v558_v4, %v382_v3  ;;  %v383_v9 = vld [vmem:[%s1623_s28 + $0x498] sm:$0xff]  ;;  %v384_v11 = vld [vmem:[%s1623_s28 + $0x4a0] sm:$0xff]  ;;  %v385_v15 = vld [vmem:[%s1623_s28 + $0x4a8] sm:$0xff] }
  0xd9   : > { %v559_v10 = vld [vmem:[%s1631_s24 + $0x498] sm:$0xff]  ;;  %1081 = vst [vmem:[%s1653_s20 + $0x468] sm:$0xff] %v905_v0  ;;  %v908_v12 = vmax.f32 %v732_v1, 0.0  ;;  %v560_v14 = vld [vmem:[%s1631_s24 + $0x4a0] sm:$0xff]  ;;  %v561_v16 = vld [vmem:[%s1631_s24 + $0x4a8] sm:$0xff] }
  0xda   : > { %v735_v13 = vadd.f32 %v559_v10, %v383_v9  ;;  %1082 = vst [vmem:[%s1653_s20 + $0x470] sm:$0xff] %v906_v5  ;;  %1083 = vst [vmem:[%s1653_s20 + $0x478] sm:$0xff] %v907_v6  ;;  %v909_v17 = vmax.f32 %v733_v7, 0.0  ;;  %v910_v18 = vmax.f32 %v734_v8, 0.0  ;;  %v736_v19 = vadd.f32 %v560_v14, %v384_v11  ;;  %v386_v21 = vld [vmem:[%s1623_s28 + $0x4b0] sm:$0xff]  ;;  %v387_v23 = vld [vmem:[%s1623_s28 + $0x4b8] sm:$0xff] }
  0xdb   : > { %v737_v20 = vadd.f32 %v561_v16, %v385_v15  ;;  %v562_v22 = vld [vmem:[%s1631_s24 + $0x4b0] sm:$0xff]  ;;  %1084 = vst [vmem:[%s1653_s20 + $0x480] sm:$0xff] %v908_v12  ;;  %v563_v26 = vld [vmem:[%s1631_s24 + $0x4b8] sm:$0xff]  ;;  %v388_v27 = vld [vmem:[%s1623_s28 + $0x4c0] sm:$0xff] }
  0xdc   : > { %v911_v24 = vmax.f32 %v735_v13, 0.0  ;;  %v738_v25 = vadd.f32 %v562_v22, %v386_v21  ;;  %v564_v28 = vld [vmem:[%s1631_s24 + $0x4c0] sm:$0xff]  ;;  %1085 = vst [vmem:[%s1653_s20 + $0x488] sm:$0xff] %v909_v17  ;;  %1086 = vst [vmem:[%s1653_s20 + $0x490] sm:$0xff] %v910_v18  ;;  %v912_v29 = vmax.f32 %v736_v19, 0.0  ;;  %v739_v31 = vadd.f32 %v563_v26, %v387_v23  ;;  %v389_v33 = vld [vmem:[%s1623_s28 + $0x4c8] sm:$0xff] }
  0xdd   : > { %v913_v30 = vmax.f32 %v737_v20, 0.0  ;;  %v740_v32 = vadd.f32 %v564_v28, %v388_v27  ;;  %v565_v34 = vld [vmem:[%s1631_s24 + $0x4c8] sm:$0xff]  ;;  %v390_v35 = vld [vmem:[%s1623_s28 + $0x4d0] sm:$0xff]  ;;  %v391_v39 = vld [vmem:[%s1623_s28 + $0x4d8] sm:$0xff] }
  0xde   : > { %1087 = vst [vmem:[%s1653_s20 + $0x498] sm:$0xff] %v911_v24  ;;  %v914_v36 = vmax.f32 %v738_v25, 0.0  ;;  %v741_v37 = vadd.f32 %v565_v34, %v389_v33  ;;  %v566_v38 = vld [vmem:[%s1631_s24 + $0x4d0] sm:$0xff]  ;;  %v567_v40 = vld [vmem:[%s1631_s24 + $0x4d8] sm:$0xff]  ;;  %1088 = vst [vmem:[%s1653_s20 + $0x4a0] sm:$0xff] %v912_v29  ;;  %v915_v41 = vmax.f32 %v739_v31, 0.0 }
  0xdf   : > { %1089 = vst [vmem:[%s1653_s20 + $0x4a8] sm:$0xff] %v913_v30  ;;  %v916_v42 = vmax.f32 %v740_v32, 0.0  ;;  %v742_v43 = vadd.f32 %v566_v38, %v390_v35  ;;  %v743_v44 = vadd.f32 %v567_v40, %v391_v39  ;;  %v392_v45 = vld [vmem:[%s1623_s28 + $0x4e0] sm:$0xff]  ;;  %v393_v47 = vld [vmem:[%s1623_s28 + $0x4e8] sm:$0xff]  ;;  %v394_v51 = vld [vmem:[%s1623_s28 + $0x4f0] sm:$0xff] }
  0xe0   : > { %v568_v46 = vld [vmem:[%s1631_s24 + $0x4e0] sm:$0xff]  ;;  %1090 = vst [vmem:[%s1653_s20 + $0x4b0] sm:$0xff] %v914_v36  ;;  %v917_v48 = vmax.f32 %v741_v37, 0.0  ;;  %v569_v50 = vld [vmem:[%s1631_s24 + $0x4e8] sm:$0xff]  ;;  %v570_v52 = vld [vmem:[%s1631_s24 + $0x4f0] sm:$0xff] }
  0xe1   : > { %v744_v49 = vadd.f32 %v568_v46, %v392_v45  ;;  %1091 = vst [vmem:[%s1653_s20 + $0x4b8] sm:$0xff] %v915_v41  ;;  %1092 = vst [vmem:[%s1653_s20 + $0x4c0] sm:$0xff] %v916_v42  ;;  %v918_v53 = vmax.f32 %v742_v43, 0.0  ;;  %v919_v54 = vmax.f32 %v743_v44, 0.0  ;;  %v745_v55 = vadd.f32 %v569_v50, %v393_v47  ;;  %v395_v57 = vld [vmem:[%s1623_s28 + $0x4f8] sm:$0xff]  ;;  %v396_v59 = vld [vmem:[%s1623_s28 + $0x500] sm:$0xff] }
  0xe2   : > { %v746_v56 = vadd.f32 %v570_v52, %v394_v51  ;;  %v571_v58 = vld [vmem:[%s1631_s24 + $0x4f8] sm:$0xff]  ;;  %1093 = vst [vmem:[%s1653_s20 + $0x4c8] sm:$0xff] %v917_v48  ;;  %v572_v62 = vld [vmem:[%s1631_s24 + $0x500] sm:$0xff]  ;;  %v397_v63 = vld [vmem:[%s1623_s28 + $0x508] sm:$0xff] }
  0xe3   : > { %v920_v60 = vmax.f32 %v744_v49, 0.0  ;;  %v747_v61 = vadd.f32 %v571_v58, %v395_v57  ;;  %v573_v0 = vld [vmem:[%s1631_s24 + $0x508] sm:$0xff]  ;;  %1094 = vst [vmem:[%s1653_s20 + $0x4d0] sm:$0xff] %v918_v53  ;;  %1095 = vst [vmem:[%s1653_s20 + $0x4d8] sm:$0xff] %v919_v54  ;;  %v921_v1 = vmax.f32 %v745_v55, 0.0  ;;  %v748_v3 = vadd.f32 %v572_v62, %v396_v59  ;;  %v398_v5 = vld [vmem:[%s1623_s28 + $0x510] sm:$0xff] }
  0xe4   : > { %v922_v2 = vmax.f32 %v746_v56, 0.0  ;;  %v749_v4 = vadd.f32 %v573_v0, %v397_v63  ;;  %v574_v6 = vld [vmem:[%s1631_s24 + $0x510] sm:$0xff]  ;;  %v399_v7 = vld [vmem:[%s1623_s28 + $0x518] sm:$0xff]  ;;  %v400_v11 = vld [vmem:[%s1623_s28 + $0x520] sm:$0xff] }
  0xe5   : > { %1096 = vst [vmem:[%s1653_s20 + $0x4e0] sm:$0xff] %v920_v60  ;;  %v923_v8 = vmax.f32 %v747_v61, 0.0  ;;  %v750_v9 = vadd.f32 %v574_v6, %v398_v5  ;;  %v575_v10 = vld [vmem:[%s1631_s24 + $0x518] sm:$0xff]  ;;  %v576_v12 = vld [vmem:[%s1631_s24 + $0x520] sm:$0xff]  ;;  %1097 = vst [vmem:[%s1653_s20 + $0x4e8] sm:$0xff] %v921_v1  ;;  %v924_v13 = vmax.f32 %v748_v3, 0.0 }
  0xe6   : > { %1098 = vst [vmem:[%s1653_s20 + $0x4f0] sm:$0xff] %v922_v2  ;;  %v925_v14 = vmax.f32 %v749_v4, 0.0  ;;  %v751_v15 = vadd.f32 %v575_v10, %v399_v7  ;;  %v752_v16 = vadd.f32 %v576_v12, %v400_v11  ;;  %v401_v17 = vld [vmem:[%s1623_s28 + $0x528] sm:$0xff]  ;;  %v402_v19 = vld [vmem:[%s1623_s28 + $0x530] sm:$0xff]  ;;  %v403_v23 = vld [vmem:[%s1623_s28 + $0x538] sm:$0xff] }
  0xe7   : > { %v577_v18 = vld [vmem:[%s1631_s24 + $0x528] sm:$0xff]  ;;  %1099 = vst [vmem:[%s1653_s20 + $0x4f8] sm:$0xff] %v923_v8  ;;  %v926_v20 = vmax.f32 %v750_v9, 0.0  ;;  %v578_v22 = vld [vmem:[%s1631_s24 + $0x530] sm:$0xff]  ;;  %v579_v24 = vld [vmem:[%s1631_s24 + $0x538] sm:$0xff] }
  0xe8   : > { %v753_v21 = vadd.f32 %v577_v18, %v401_v17  ;;  %1100 = vst [vmem:[%s1653_s20 + $0x500] sm:$0xff] %v924_v13  ;;  %1101 = vst [vmem:[%s1653_s20 + $0x508] sm:$0xff] %v925_v14  ;;  %v927_v25 = vmax.f32 %v751_v15, 0.0  ;;  %v928_v26 = vmax.f32 %v752_v16, 0.0  ;;  %v754_v27 = vadd.f32 %v578_v22, %v402_v19  ;;  %v404_v29 = vld [vmem:[%s1623_s28 + $0x540] sm:$0xff]  ;;  %v405_v31 = vld [vmem:[%s1623_s28 + $0x548] sm:$0xff] }
  0xe9   : > { %v755_v28 = vadd.f32 %v579_v24, %v403_v23  ;;  %v580_v30 = vld [vmem:[%s1631_s24 + $0x540] sm:$0xff]  ;;  %1102 = vst [vmem:[%s1653_s20 + $0x510] sm:$0xff] %v926_v20  ;;  %v581_v34 = vld [vmem:[%s1631_s24 + $0x548] sm:$0xff]  ;;  %v406_v35 = vld [vmem:[%s1623_s28 + $0x550] sm:$0xff] }
  0xea   : > { %v929_v32 = vmax.f32 %v753_v21, 0.0  ;;  %v756_v33 = vadd.f32 %v580_v30, %v404_v29  ;;  %v582_v36 = vld [vmem:[%s1631_s24 + $0x550] sm:$0xff]  ;;  %1103 = vst [vmem:[%s1653_s20 + $0x518] sm:$0xff] %v927_v25  ;;  %1104 = vst [vmem:[%s1653_s20 + $0x520] sm:$0xff] %v928_v26  ;;  %v930_v37 = vmax.f32 %v754_v27, 0.0  ;;  %v757_v39 = vadd.f32 %v581_v34, %v405_v31  ;;  %v407_v41 = vld [vmem:[%s1623_s28 + $0x558] sm:$0xff] }
  0xeb   : > { %v931_v38 = vmax.f32 %v755_v28, 0.0  ;;  %v758_v40 = vadd.f32 %v582_v36, %v406_v35  ;;  %v583_v42 = vld [vmem:[%s1631_s24 + $0x558] sm:$0xff]  ;;  %v408_v43 = vld [vmem:[%s1623_s28 + $0x560] sm:$0xff]  ;;  %v409_v47 = vld [vmem:[%s1623_s28 + $0x568] sm:$0xff] }
  0xec   : > { %1105 = vst [vmem:[%s1653_s20 + $0x528] sm:$0xff] %v929_v32  ;;  %v932_v44 = vmax.f32 %v756_v33, 0.0  ;;  %v759_v45 = vadd.f32 %v583_v42, %v407_v41  ;;  %v584_v46 = vld [vmem:[%s1631_s24 + $0x560] sm:$0xff]  ;;  %v585_v48 = vld [vmem:[%s1631_s24 + $0x568] sm:$0xff]  ;;  %1106 = vst [vmem:[%s1653_s20 + $0x530] sm:$0xff] %v930_v37  ;;  %v933_v49 = vmax.f32 %v757_v39, 0.0 }
  0xed   : > { %1107 = vst [vmem:[%s1653_s20 + $0x538] sm:$0xff] %v931_v38  ;;  %v934_v50 = vmax.f32 %v758_v40, 0.0  ;;  %v760_v51 = vadd.f32 %v584_v46, %v408_v43  ;;  %v761_v52 = vadd.f32 %v585_v48, %v409_v47  ;;  %v410_v53 = vld [vmem:[%s1623_s28 + $0x570] sm:$0xff]  ;;  %v411_v55 = vld [vmem:[%s1623_s28 + $0x578] sm:$0xff] }
  0xee   : > { %v586_v54 = vld [vmem:[%s1631_s24 + $0x570] sm:$0xff]  ;;  %1108 = vst [vmem:[%s1653_s20 + $0x540] sm:$0xff] %v932_v44  ;;  %v935_v56 = vmax.f32 %v759_v45, 0.0  ;;  %v587_v58 = vld [vmem:[%s1631_s24 + $0x578] sm:$0xff]  ;;  %1109 = vst [vmem:[%s1653_s20 + $0x548] sm:$0xff] %v933_v49 }
  0xef   : > { %v762_v57 = vadd.f32 %v586_v54, %v410_v53  ;;  %1110 = vst [vmem:[%s1653_s20 + $0x550] sm:$0xff] %v934_v50  ;;  %v936_v59 = vmax.f32 %v760_v51, 0.0  ;;  %v937_v60 = vmax.f32 %v761_v52, 0.0  ;;  %v763_v61 = vadd.f32 %v587_v58, %v411_v55  ;;  %1123 = sbr.rel (!%p2238_p6) target bundleno = 271 (0x10f), region = 40 }
  0xf0   : > { %1111 = vst [vmem:[%s1653_s20 + $0x558] sm:$0xff] %v935_v56 }
  0xf1   : > { %v938_v62 = vmax.f32 %v762_v57, 0.0  ;;  %1112 = vst [vmem:[%s1653_s20 + $0x560] sm:$0xff] %v936_v59  ;;  %1113 = vst [vmem:[%s1653_s20 + $0x568] sm:$0xff] %v937_v60  ;;  %v939_v63 = vmax.f32 %v763_v61, 0.0 }
  0xf3   : > { %1114 = vst [vmem:[%s1653_s20 + $0x570] sm:$0xff] %v938_v62  ;;  %1115 = vst [vmem:[%s1653_s20 + $0x578] sm:$0xff] %v939_v63 }
  0xf4   : > { %s2250_s30 = smov (!%p1126_p5, %s1125_s30), 22 }
  0xf5   : > { %s2172_s3 = sshll.u32 %s2250_s30, 10 }
  0xf6   : > { %s1131_s5 = ssub.s32 22528, %s2172_s3 }
  0xf7   : > { %1132 = vsyncadd %s1117_s29, %s1131_s5  ;;  %p1254_p7 = scmp.ne.s32.totalorder %s2172_s3, 0  ;;  %s1272_s21 = smul.u32 22528, %s1489_s13 }
  0xf8   : > { %s1138_s6 = sshll.u32 %s1653_s20, 4  ;;  %s1450_s27 = smov [#allocation7]   ;;  %s2185_s6 = int_to_ptr.vmem [resolvable:$true] %s1138_s6 }
  0xf9   : > { %s2183_s16 = scalar_lea.hbm %s2232_s2, %s1272_s21  ;;  %s1374_s23 = scalar_lea.vmem %s2185_s6, %s2172_s3 }
  0xfa   : > { %p1375_p8 = scmp.ne.s32.totalorder %s2185_s6, %s1374_s23  ;;  %s1378_s19 = sshll.u32 %s1450_s27, 4  ;;  %s1379_s19 = int_to_ptr.vmem [resolvable:$false] %s1378_s19 }
  0xfb   : > { %s1380_s13 = scalar_lea.vmem %s1379_s19, 45056  ;;  %p1381_p1 = scmp.lt.s32.totalorder %s2185_s6, %s1379_s19 }
  0xfc   : > { %p1376_p12 = pnand %p1375_p8, %p1254_p7  ;;  %p1382_p3 = scmp.lt.s32.totalorder %s1380_s13, %s1374_s23 }
  0xfe   : > { %p1377_p0 = pneg %p1376_p12  ;;  %p1383_p9 = por %p1382_p3, %p1381_p1 }
 0x100   : > { %p1384_p10 = pnand %p1383_p9, %p1377_p0 }
 0x102   : > { %1387 = shalt.err (!%p1384_p10)
}
 0x103   : > { %s1388_s7 = scalar_lea.hbm %s2183_s16, %s2172_s3  ;;  %s1392_s17 = scalar_lea.hbm %s2232_s2, 44032 }
 0x104   : > { %p1389_p11 = scmp.ne.s32.totalorder %s2183_s16, %s1388_s7  ;;  %p1393_p4 = scmp.lt.s32.totalorder %s2183_s16, %s2232_s2 }
 0x105   : > { %p1394_p6 = scmp.lt.s32.totalorder %s1392_s17, %s1388_s7 }
 0x106   : > { %p1390_p13 = pnand %p1389_p11, %p1254_p7 }
 0x107   : > { %p1395_p5 = por %p1394_p6, %p1393_p4 }
 0x108   : > { %p1391_p2 = pneg %p1390_p13 }
 0x10a   : > { %p1396_p8 = pnand %p1395_p5, %p1391_p2 }
 0x10c   : > { %1399 = shalt.err (!%p1396_p8)
}
 0x10d   : > { %s1451_s25 = smov 1024   ;;  %s1452_s30 = smov 64  }
 0x10e   : > { %1144 = dma.vmem_to_hbm [thread:$0]  (%p1254_p7), %s2185_s6, %s2172_s3, %s2183_s16, %s1117_s29, %s1451_s25, %s1451_s25, %s1452_s30  }
 0x10f PF: > { %s1153_s5 = sand.u32 1, %s1430_s9   ;;  %p2239_p12 = scmp.ne.s32.totalorder %s2237_s22, 0 }
 0x110   : > { %p2240_p0 = scmp.ge.s32.totalorder %s1442_s12, 2  ;;  %s1154_s21 = scalar_lea.sflag [#allocation4], %s1153_s5 }
 0x112   : > { %p1280_p1 = pnand %p2240_p0, %p2239_p12 }
 0x114   : > { %p1281_p3 = pneg %p1280_p1 }
 0x116   : > { %1425 = dma.done.wait (%p1281_p3), %s1154_s21, 22528  }
 0x117   : > { %1427 = vsyncadd (%p1281_p3), %s1154_s21, 4294944768  ;;  %p18_p9 = scmp.ge.s32.totalorder %s1493_s15, 4   ;;  %s2241_s9 = smov %s1434_s10 }
 0x118   : > { %s2242_s10 = smov %s1438_s11  ;;  %s2243_s11 = smov %s1505_s18 }
 0x119   : > { %s2244_s12 = smov %s1493_s15  ;;  %20 = sbr.rel (!%p18_p9) target bundleno = 7 (0x7), region = 86 }
 0x11e   :  { %1159 = vsyncpa [#allocation3], 1 }
 0x11f   :  { %1161 = vsyncpa [#allocation3 + $0x1], 1 }
 0x120   :  { %1162 = vsyncpa [#allocation6], 1 }
 0x121   :  { %1164 = vsyncpa [#allocation6 + $0x1], 1 }
 0x122   :  { %1165 = vsyncpa [#allocation4], 1 }
 0x123   :  { %1167 = vsyncpa [#allocation4 + $0x1], 1 }

</bundles_post_ra>
